<compile_context>
chip_gen: v7x
topology: tpu7x:2x2x1
jax: 0.10.0
libtpu: 0.0.40
codegen_flags: <defaults>
</compile_context>

<pallas_src>
import math

import jax
import jax.numpy as jnp
from jax.experimental import pallas as pl
from jax.experimental.pallas import tpu as pltpu

# ---------------- synthetic model config (small) ----------------
VOCAB = 100
MAX_POS = 64
TYPE_VOCAB = 2
HIDDEN = 32
NUM_HEADS = 2
HEAD_DIM = HIDDEN // NUM_HEADS
INTERMEDIATE = 64
NUM_LAYERS = 2
SEQ = 8
BATCH = 4
DIM_PROJ = 16
OUT_PAD = 128        # lane-dense output width; wrapper slices back to DIM_PROJ
EPS = 1e-12          # BERT LayerNorm eps
VEC_W = 3 * HIDDEN   # width of the packed per-layer small-vector rows (96)


def _ln(x, g, b):
    mean = jnp.mean(x, axis=-1, keepdims=True)
    var = jnp.mean((x - mean) ** 2, axis=-1, keepdims=True)
    return (x - mean) * jax.lax.rsqrt(var + EPS) * g + b


def _gelu(x):
    # exact (erf) GELU, matching BERT's "gelu" activation
    return 0.5 * x * (1.0 + jax.lax.erf(x / math.sqrt(2.0)))


# ---------------- the fused per-layer Pallas kernel (grid over layers) ----------------
def encoder_layer_kernel(x_ref, emb_ln_ref, wqkv_ref, wo_ref, w1_ref, w2_ref,
                         vecs_ref, wp_ref, bp_ref, o_ref, xs_ref):
    l = pl.program_id(0)

    # ---- first grid step: embedding LayerNorm into the resident activation ----
    @pl.when(l == 0)
    def _():
        emb_ln = emb_ln_ref[...]                       # (2, H): [gamma; beta]
        xs_ref[...] = _ln(x_ref[...], emb_ln[0:1, :], emb_ln[1:2, :])

    x = xs_ref[...]                                    # (B*S, H), batch on sublanes

    wqkv = wqkv_ref[0]                                 # (H, 3H) [Wq*scale | Wk | Wv]
    wo = wo_ref[0]                                     # (H, H)
    w1 = w1_ref[0]                                     # (H, I)
    w2 = w2_ref[0]                                     # (I, H)
    vecs = vecs_ref[0]                                 # (8, VEC_W) packed small vectors
    bqkv = vecs[0:1, :]                                # (1, 3H) [bq*scale | bk | bv]
    bo = vecs[1:2, :HIDDEN]
    ln1_g = vecs[2:3, :HIDDEN]
    ln1_b = vecs[3:4, :HIDDEN]
    b1 = vecs[4:5, :INTERMEDIATE]
    b2 = vecs[5:6, :HIDDEN]
    ln2_g = vecs[6:7, :HIDDEN]
    ln2_b = vecs[7:8, :HIDDEN]

    # ---- self-attention: one fused QKV matmul, all heads in one batched einsum ----
    qkv = jnp.dot(x, wqkv, preferred_element_type=jnp.float32) + bqkv   # (B*S, 3H)

    def split_heads(t):
        # (B*S, H) -> (NH*B, S, HD); fused batch index z = h*B + b
        cols = [t[:, h * HEAD_DIM:(h + 1) * HEAD_DIM] for h in range(NUM_HEADS)]
        return jnp.concatenate(cols, axis=0).reshape(NUM_HEADS * BATCH, SEQ, HEAD_DIM)

    q = split_heads(qkv[:, 0 * HIDDEN:1 * HIDDEN])
    k = split_heads(qkv[:, 1 * HIDDEN:2 * HIDDEN])
    v = split_heads(qkv[:, 2 * HIDDEN:3 * HIDDEN])

    # scores / softmax / context, batched over all (head, batch) pairs at once
    # (scale already folded into Wq/bq at pack time)
    s = jnp.einsum("zqd,zkd->zqk", q, k, preferred_element_type=jnp.float32)  # (NH*B,S,S)
    s = s - jnp.max(s, axis=-1, keepdims=True)
    p = jnp.exp(s)
    p = p / jnp.sum(p, axis=-1, keepdims=True)          # exact reciprocal (accuracy)
    ctx = jnp.einsum("zqk,zkd->zqd", p, v, preferred_element_type=jnp.float32)

    # merge heads back onto lanes, then ONE output-projection matmul
    ctx = ctx.reshape(NUM_HEADS, BATCH * SEQ, HEAD_DIM)
    ctx = jnp.concatenate([ctx[h] for h in range(NUM_HEADS)], axis=-1)        # (B*S, H)
    attn = jnp.dot(ctx, wo, preferred_element_type=jnp.float32) + bo
    x = _ln(x + attn, ln1_g, ln1_b)

    # ---- FFN ----
    hmid = jnp.dot(x, w1, preferred_element_type=jnp.float32) + b1
    hmid = _gelu(hmid)
    y = jnp.dot(hmid, w2, preferred_element_type=jnp.float32) + b2
    x = _ln(x + y, ln2_g, ln2_b)

    xs_ref[...] = x                                     # carried to next layer

    # ---- last grid step: CLS projection + F.normalize(dim=1), lane-dense write ----
    @pl.when(l == pl.num_programs(0) - 1)
    def _():
        cls = x.reshape(BATCH, SEQ, HIDDEN)[:, 0, :]    # (B, H)
        z = jnp.dot(cls, wp_ref[...], preferred_element_type=jnp.float32) + bp_ref[...]
        nrm_sq = jnp.sum(z * z, axis=-1, keepdims=True)  # zero-padded cols don't contribute
        # 1 / max(||z||, 1e-12) == rsqrt(max(||z||^2, 1e-24))
        o_ref[...] = z * jax.lax.rsqrt(jnp.maximum(nrm_sq, 1e-24))


def bert_forward_fused(x_emb_flat, packed):
    grid_spec = pltpu.PrefetchScalarGridSpec(
        num_scalar_prefetch=0,
        grid=(NUM_LAYERS,),
        in_specs=[
            pl.BlockSpec((BATCH * SEQ, HIDDEN), lambda l: (0, 0)),             # x (resident)
            pl.BlockSpec((2, HIDDEN), lambda l: (0, 0)),                       # emb LN
            pl.BlockSpec((1, HIDDEN, 3 * HIDDEN), lambda l: (l, 0, 0)),        # wqkv[l]
            pl.BlockSpec((1, HIDDEN, HIDDEN), lambda l: (l, 0, 0)),            # wo[l]
            pl.BlockSpec((1, HIDDEN, INTERMEDIATE), lambda l: (l, 0, 0)),      # w1[l]
            pl.BlockSpec((1, INTERMEDIATE, HIDDEN), lambda l: (l, 0, 0)),      # w2[l]
            pl.BlockSpec((1, 8, VEC_W), lambda l: (l, 0, 0)),                  # vecs[l]
            pl.BlockSpec((HIDDEN, OUT_PAD), lambda l: (0, 0)),                 # wp (padded)
            pl.BlockSpec((1, OUT_PAD), lambda l: (0, 0)),                      # bp (padded)
        ],
        out_specs=pl.BlockSpec((BATCH, OUT_PAD), lambda l: (0, 0)),
        scratch_shapes=[pltpu.VMEM((BATCH * SEQ, HIDDEN), jnp.float32)],       # resident x
    )
    out = pl.pallas_call(
        encoder_layer_kernel,
        grid_spec=grid_spec,
        out_shape=jax.ShapeDtypeStruct((BATCH, OUT_PAD), jnp.float32),
        compiler_params=pltpu.CompilerParams(
            # layer axis is a carried reduction -> "arbitrary"
            dimension_semantics=("arbitrary",),
            # explicit scoped-VMEM budget; at real dims size per-layer blocks +
            # 2x double-buffering against v7x's 64 MiB physical VMEM.
            vmem_limit_bytes=32 * 1024 * 1024,
        ),
    )(x_emb_flat, packed["emb_ln"], packed["wqkv"], packed["wo"],
      packed["w1"], packed["w2"], packed["vecs"], packed["wp"], packed["bp"])
    return out[:, :DIM_PROJ]     # lane-dense kernel output, sliced back to DIM_PROJ


# ---------------- parameters (deterministic, synthetic) ----------------
def init_params(key):
    keys = iter(jax.random.split(key, 64))

    def nrm(shape):
        return 0.02 * jax.random.normal(next(keys), shape, jnp.float32)

    params = {
        "word_emb": nrm((VOCAB, HIDDEN)),
        "pos_emb": nrm((MAX_POS, HIDDEN)),
        "type_emb": nrm((TYPE_VOCAB, HIDDEN)),
        "emb_ln_g": jnp.ones((1, HIDDEN), jnp.float32),
        "emb_ln_b": jnp.zeros((1, HIDDEN), jnp.float32),
        "layers": [],
        "proj_w": nrm((HIDDEN, DIM_PROJ)),
        "proj_b": jnp.zeros((1, DIM_PROJ), jnp.float32),
    }
    for _ in range(NUM_LAYERS):
        layer = {
            "attn": {
                "wq": nrm((HIDDEN, HIDDEN)), "bq": jnp.zeros((1, HIDDEN), jnp.float32),
                "wk": nrm((HIDDEN, HIDDEN)), "bk": jnp.zeros((1, HIDDEN), jnp.float32),
                "wv": nrm((HIDDEN, HIDDEN)), "bv": jnp.zeros((1, HIDDEN), jnp.float32),
                "wo": nrm((HIDDEN, HIDDEN)), "bo": jnp.zeros((1, HIDDEN), jnp.float32),
                "ln_g": jnp.ones((1, HIDDEN), jnp.float32),
                "ln_b": jnp.zeros((1, HIDDEN), jnp.float32),
            },
            "ffn": {
                "w1": nrm((HIDDEN, INTERMEDIATE)), "b1": jnp.zeros((1, INTERMEDIATE), jnp.float32),
                "w2": nrm((INTERMEDIATE, HIDDEN)), "b2": jnp.zeros((1, HIDDEN), jnp.float32),
                "ln_g": jnp.ones((1, HIDDEN), jnp.float32),
                "ln_b": jnp.zeros((1, HIDDEN), jnp.float32),
            },
        }
        params["layers"].append(layer)
    return params


def pack_params(params):
    """Stack per-layer weights along L; pack tiny vectors; pad projection to 128 lanes."""
    scale = 1.0 / math.sqrt(HEAD_DIM)   # 0.25 (power of two -> exact fold into Wq/bq)

    def pad_row(v):
        v = v.reshape(1, -1)
        return jnp.pad(v, ((0, 0), (0, VEC_W - v.shape[1])))

    wqkv, wo, w1, w2, vecs = [], [], [], [], []
    for layer in params["layers"]:
        a, f = layer["attn"], layer["ffn"]
        wqkv.append(jnp.concatenate([a["wq"] * scale, a["wk"], a["wv"]], axis=1))
        wo.append(a["wo"])
        w1.append(f["w1"])
        w2.append(f["w2"])
        vecs.append(jnp.concatenate([
            pad_row(jnp.concatenate([a["bq"] * scale, a["bk"], a["bv"]], axis=1)),
            pad_row(a["bo"]), pad_row(a["ln_g"]), pad_row(a["ln_b"]),
            pad_row(f["b1"]), pad_row(f["b2"]), pad_row(f["ln_g"]), pad_row(f["ln_b"]),
        ], axis=0))
    return {
        "emb_ln": jnp.concatenate([params["emb_ln_g"], params["emb_ln_b"]], axis=0),
        "wqkv": jnp.stack(wqkv),       # (L, H, 3H)
        "wo": jnp.stack(wo),           # (L, H, H)
        "w1": jnp.stack(w1),           # (L, H, I)
        "w2": jnp.stack(w2),           # (L, I, H)
        "vecs": jnp.stack(vecs),       # (L, 8, VEC_W)
        # zero-pad projection to 128 lanes: lane-dense output, zero cols don't change the L2 norm
        "wp": jnp.pad(params["proj_w"], ((0, 0), (0, OUT_PAD - DIM_PROJ))),   # (H, 128)
        "bp": jnp.pad(params["proj_b"], ((0, 0), (0, OUT_PAD - DIM_PROJ))),   # (1, 128)
    }


# ---------------- forward (Pallas) ----------------
def bert_encode(token_ids, params, packed):
    B, S = token_ids.shape
    # glue: embedding gathers stay in plain JAX (see TODO above)
    we = jnp.take(params["word_emb"], token_ids, axis=0)            # (B, S, H)
    pe = params["pos_emb"][:S][None, :, :]                          # (1, S, H)
    te = params["type_emb"][0][None, None, :]                       # (1, 1, H)
    x = (we + pe + te).reshape(B * S, HIDDEN)                       # batch onto sublanes
    return bert_forward_fused(x, packed)


# ---------------- pure-JAX reference for verification ----------------
def _ref_attn(x, p):
    B, S, H = x.shape
    q = x @ p["wq"] + p["bq"]
    k = x @ p["wk"] + p["bk"]
    v = x @ p["wv"] + p["bv"]
    split = lambda t: t.reshape(B, S, NUM_HEADS, HEAD_DIM).transpose(0, 2, 1, 3)
    qh, kh, vh = split(q), split(k), split(v)
    s = jnp.einsum("bhqd,bhkd->bhqk", qh, kh) / math.sqrt(HEAD_DIM)
    a = jax.nn.softmax(s, axis=-1)
    ctx = jnp.einsum("bhqk,bhkd->bhqd", a, vh).transpose(0, 2, 1, 3).reshape(B, S, H)
    return _ln(x + ctx @ p["wo"] + p["bo"], p["ln_g"], p["ln_b"])


def _ref_ffn(x, p):
    h = _gelu(x @ p["w1"] + p["b1"])
    return _ln(x + h @ p["w2"] + p["b2"], p["ln_g"], p["ln_b"])


def bert_encode_ref(token_ids, params):
    B, S = token_ids.shape
    x = (jnp.take(params["word_emb"], token_ids, axis=0)
         + params["pos_emb"][:S][None, :, :]
         + params["type_emb"][0][None, None, :])
    x = _ln(x, params["emb_ln_g"], params["emb_ln_b"])
    for layer in params["layers"]:
        x = _ref_attn(x, layer["attn"])
        x = _ref_ffn(x, layer["ffn"])
    z = x[:, 0, :] @ params["proj_w"] + params["proj_b"]
    nrm = jnp.sqrt(jnp.sum(z * z, axis=-1, keepdims=True))
    return z / jnp.maximum(nrm, 1e-12)


if __name__ == "__main__":
    key = jax.random.PRNGKey(0)
    params = init_params(key)
    packed = pack_params(params)

    # deterministic "tokenized" batch (fixed-length, no padding)
    ids = (jnp.arange(BATCH * SEQ, dtype=jnp.int32) * 7) % (VOCAB - 2) + 2
    ids = ids.reshape(BATCH, SEQ)
    ids = ids.at[:, 0].set(1)  # CLS token id

    encode = jax.jit(bert_encode)
    out = jax.block_until_ready(encode(ids, params, packed))

    with jax.default_matmul_precision("highest"):
        ref = bert_encode_ref(ids, params)

    assert out.shape == (BATCH, DIM_PROJ)
    assert bool(jnp.all(jnp.isfinite(out)))
    # exact softmax reciprocal -> tolerance tightened 5x vs the previous version
    assert bool(jnp.allclose(out, ref, atol=2e-4, rtol=2e-4))
    print("KERNEL_OK")
</pallas_src>

<mosaic_0001>
module attributes {stable_mosaic.version = 11 : i64} {
  func.func @encoder_layer_kernel(%arg0: i32, %arg1: memref<32x32xf32, #tpu.memory_space<vmem>>, %arg2: memref<2x32xf32, #tpu.memory_space<vmem>>, %arg3: memref<1x32x96xf32, #tpu.memory_space<vmem>>, %arg4: memref<1x32x32xf32, #tpu.memory_space<vmem>>, %arg5: memref<1x32x64xf32, #tpu.memory_space<vmem>>, %arg6: memref<1x64x32xf32, #tpu.memory_space<vmem>>, %arg7: memref<1x8x96xf32, #tpu.memory_space<vmem>>, %arg8: memref<32x128xf32, #tpu.memory_space<vmem>>, %arg9: memref<1x128xf32, #tpu.memory_space<vmem>>, %arg10: memref<4x128xf32, #tpu.memory_space<vmem>>, %arg11: memref<32x32xf32, #tpu.memory_space<vmem>>) attributes {dimension_semantics = [#tpu.dimension_semantics<arbitrary>], iteration_bounds = array<i64: 2>, scalar_prefetch = 0 : i64, scratch_operands = 1 : i64, tpu.core_type = #tpu.core_type<tc>, window_params = [{pipeline_mode = #tpu.pipeline_mode<synchronous>, transform_indices = @transform_0, window_bounds = array<i64: 32, 32>}, {pipeline_mode = #tpu.pipeline_mode<synchronous>, transform_indices = @transform_1, window_bounds = array<i64: 2, 32>}, {transform_indices = @transform_2, window_bounds = array<i64: 1, 32, 96>}, {transform_indices = @transform_3, window_bounds = array<i64: 1, 32, 32>}, {transform_indices = @transform_4, window_bounds = array<i64: 1, 32, 64>}, {transform_indices = @transform_5, window_bounds = array<i64: 1, 64, 32>}, {transform_indices = @transform_6, window_bounds = array<i64: 1, 8, 96>}, {pipeline_mode = #tpu.pipeline_mode<synchronous>, transform_indices = @transform_7, window_bounds = array<i64: 32, 128>}, {pipeline_mode = #tpu.pipeline_mode<synchronous>, transform_indices = @transform_8, window_bounds = array<i64: 1, 128>}, {pipeline_mode = #tpu.pipeline_mode<synchronous>, transform_indices = @transform_9, window_bounds = array<i64: 4, 128>}]} {
    %c0_i32 = arith.constant 0 : i32
    %0 = arith.cmpi eq, %arg0, %c0_i32 : i32
    %1 = arith.extui %0 : i1 to i32
    %c0_i32_0 = arith.constant 0 : i32
    %2 = arith.cmpi ne, %1, %c0_i32_0 : i32
    scf.if %2 {
      %c0_40 = arith.constant 0 : index
      %c0_41 = arith.constant 0 : index
      %124 = vector.load %arg2[%c0_40, %c0_41] : memref<2x32xf32, #tpu.memory_space<vmem>>, vector<2x32xf32>
      %c0_42 = arith.constant 0 : index
      %c0_43 = arith.constant 0 : index
      %125 = vector.load %arg1[%c0_42, %c0_43] : memref<32x32xf32, #tpu.memory_space<vmem>>, vector<32x32xf32>
      %126 = vector.extract_strided_slice %124 {offsets = [0, 0], sizes = [1, 32], strides = [1, 1]} : vector<2x32xf32> to vector<1x32xf32>
      %127 = vector.extract_strided_slice %124 {offsets = [1, 0], sizes = [1, 32], strides = [1, 1]} : vector<2x32xf32> to vector<1x32xf32>
      %cst_44 = arith.constant dense<0.000000e+00> : vector<32xf32>
      %128 = vector.multi_reduction <add>, %125, %cst_44 [1] : vector<32x32xf32> to vector<32xf32>
      %129 = vector.shape_cast %128 : vector<32xf32> to vector<32x1xf32>
      %cst_45 = arith.constant 3.200000e+01 : f32
      %130 = vector.broadcast %cst_45 : f32 to vector<32x1xf32>
      %131 = arith.divf %129, %130 : vector<32x1xf32>
      %132 = vector.broadcast %131 : vector<32x1xf32> to vector<32x32xf32>
      %133 = arith.subf %125, %132 : vector<32x32xf32>
      %134 = arith.mulf %133, %133 : vector<32x32xf32>
      %cst_46 = arith.constant dense<0.000000e+00> : vector<32xf32>
      %135 = vector.multi_reduction <add>, %134, %cst_46 [1] : vector<32x32xf32> to vector<32xf32>
      %136 = vector.shape_cast %135 : vector<32xf32> to vector<32x1xf32>
      %cst_47 = arith.constant 3.200000e+01 : f32
      %137 = vector.broadcast %cst_47 : f32 to vector<32x1xf32>
      %138 = arith.divf %136, %137 : vector<32x1xf32>
      %139 = vector.broadcast %131 : vector<32x1xf32> to vector<32x32xf32>
      %140 = arith.subf %125, %139 : vector<32x32xf32>
      %cst_48 = arith.constant 9.99999996E-13 : f32
      %141 = vector.broadcast %cst_48 : f32 to vector<32x1xf32>
      %142 = arith.addf %138, %141 : vector<32x1xf32>
      %143 = math.rsqrt %142 : vector<32x1xf32>
      %144 = vector.broadcast %143 : vector<32x1xf32> to vector<32x32xf32>
      %145 = arith.mulf %140, %144 : vector<32x32xf32>
      %146 = vector.broadcast %126 : vector<1x32xf32> to vector<32x32xf32>
      %147 = arith.mulf %145, %146 : vector<32x32xf32>
      %148 = vector.broadcast %127 : vector<1x32xf32> to vector<32x32xf32>
      %149 = arith.addf %147, %148 : vector<32x32xf32>
      %c0_49 = arith.constant 0 : index
      %c0_50 = arith.constant 0 : index
      %150 = vector.load %arg11[%c0_49, %c0_50] : memref<32x32xf32, #tpu.memory_space<vmem>>, vector<32x32xf32>
      tpu.vector_store %arg11[%c0_49, %c0_50], %149 {strides = array<i32>} : memref<32x32xf32, #tpu.memory_space<vmem>>, vector<32x32xf32>,
    } else {
    }
    %c0 = arith.constant 0 : index
    %c0_1 = arith.constant 0 : index
    %3 = vector.load %arg11[%c0, %c0_1] : memref<32x32xf32, #tpu.memory_space<vmem>>, vector<32x32xf32>
    %c0_2 = arith.constant 0 : index
    %c0_3 = arith.constant 0 : index
    %c0_4 = arith.constant 0 : index
    %4 = vector.load %arg3[%c0_2, %c0_3, %c0_4] : memref<1x32x96xf32, #tpu.memory_space<vmem>>, vector<1x32x96xf32>
    %5 = vector.shape_cast %4 : vector<1x32x96xf32> to vector<32x96xf32>
    %c0_5 = arith.constant 0 : index
    %c0_6 = arith.constant 0 : index
    %c0_7 = arith.constant 0 : index
    %6 = vector.load %arg4[%c0_5, %c0_6, %c0_7] : memref<1x32x32xf32, #tpu.memory_space<vmem>>, vector<1x32x32xf32>
    %7 = vector.shape_cast %6 : vector<1x32x32xf32> to vector<32x32xf32>
    %c0_8 = arith.constant 0 : index
    %c0_9 = arith.constant 0 : index
    %c0_10 = arith.constant 0 : index
    %8 = vector.load %arg5[%c0_8, %c0_9, %c0_10] : memref<1x32x64xf32, #tpu.memory_space<vmem>>, vector<1x32x64xf32>
    %9 = vector.shape_cast %8 : vector<1x32x64xf32> to vector<32x64xf32>
    %c0_11 = arith.constant 0 : index
    %c0_12 = arith.constant 0 : index
    %c0_13 = arith.constant 0 : index
    %10 = vector.load %arg6[%c0_11, %c0_12, %c0_13] : memref<1x64x32xf32, #tpu.memory_space<vmem>>, vector<1x64x32xf32>
    %11 = vector.shape_cast %10 : vector<1x64x32xf32> to vector<64x32xf32>
    %c0_14 = arith.constant 0 : index
    %c0_15 = arith.constant 0 : index
    %c0_16 = arith.constant 0 : index
    %12 = vector.load %arg7[%c0_14, %c0_15, %c0_16] : memref<1x8x96xf32, #tpu.memory_space<vmem>>, vector<1x8x96xf32>
    %13 = vector.shape_cast %12 : vector<1x8x96xf32> to vector<8x96xf32>
    %14 = vector.extract_strided_slice %13 {offsets = [0, 0], sizes = [1, 96], strides = [1, 1]} : vector<8x96xf32> to vector<1x96xf32>
    %15 = vector.extract_strided_slice %13 {offsets = [1, 0], sizes = [1, 32], strides = [1, 1]} : vector<8x96xf32> to vector<1x32xf32>
    %16 = vector.extract_strided_slice %13 {offsets = [2, 0], sizes = [1, 32], strides = [1, 1]} : vector<8x96xf32> to vector<1x32xf32>
    %17 = vector.extract_strided_slice %13 {offsets = [3, 0], sizes = [1, 32], strides = [1, 1]} : vector<8x96xf32> to vector<1x32xf32>
    %18 = vector.extract_strided_slice %13 {offsets = [4, 0], sizes = [1, 64], strides = [1, 1]} : vector<8x96xf32> to vector<1x64xf32>
    %19 = vector.extract_strided_slice %13 {offsets = [5, 0], sizes = [1, 32], strides = [1, 1]} : vector<8x96xf32> to vector<1x32xf32>
    %20 = vector.extract_strided_slice %13 {offsets = [6, 0], sizes = [1, 32], strides = [1, 1]} : vector<8x96xf32> to vector<1x32xf32>
    %21 = vector.extract_strided_slice %13 {offsets = [7, 0], sizes = [1, 32], strides = [1, 1]} : vector<8x96xf32> to vector<1x32xf32>
    %cst = arith.constant dense<0.000000e+00> : vector<32x96xf32>
    %22 = tpu.matmul %3, %5, %cst {dimension_numbers = #tpu.dot_dimension_numbers<[1], [0], [0], [1], [0, 0, 1, 1], [], []>} : vector<32x32xf32>, vector<32x96xf32>, vector<32x96xf32> -> vector<32x96xf32>
    %23 = vector.broadcast %14 : vector<1x96xf32> to vector<32x96xf32>
    %24 = arith.addf %22, %23 : vector<32x96xf32>
    %25 = vector.extract_strided_slice %24 {offsets = [0, 0], sizes = [32, 32], strides = [1, 1]} : vector<32x96xf32> to vector<32x32xf32>
    %26 = vector.extract_strided_slice %25 {offsets = [0, 0], sizes = [32, 16], strides = [1, 1]} : vector<32x32xf32> to vector<32x16xf32>
    %27 = vector.extract_strided_slice %25 {offsets = [0, 16], sizes = [32, 16], strides = [1, 1]} : vector<32x32xf32> to vector<32x16xf32>
    %28 = tpu.concatenate %26, %27 in 0 : vector<32x16xf32>, vector<32x16xf32> -> vector<64x16xf32>
    %29 = vector.shape_cast %28 : vector<64x16xf32> to vector<8x8x16xf32>
    %30 = vector.extract_strided_slice %24 {offsets = [0, 32], sizes = [32, 32], strides = [1, 1]} : vector<32x96xf32> to vector<32x32xf32>
    %31 = vector.extract_strided_slice %30 {offsets = [0, 0], sizes = [32, 16], strides = [1, 1]} : vector<32x32xf32> to vector<32x16xf32>
    %32 = vector.extract_strided_slice %30 {offsets = [0, 16], sizes = [32, 16], strides = [1, 1]} : vector<32x32xf32> to vector<32x16xf32>
    %33 = tpu.concatenate %31, %32 in 0 : vector<32x16xf32>, vector<32x16xf32> -> vector<64x16xf32>
    %34 = vector.shape_cast %33 : vector<64x16xf32> to vector<8x8x16xf32>
    %35 = vector.extract_strided_slice %24 {offsets = [0, 64], sizes = [32, 32], strides = [1, 1]} : vector<32x96xf32> to vector<32x32xf32>
    %36 = vector.extract_strided_slice %35 {offsets = [0, 0], sizes = [32, 16], strides = [1, 1]} : vector<32x32xf32> to vector<32x16xf32>
    %37 = vector.extract_strided_slice %35 {offsets = [0, 16], sizes = [32, 16], strides = [1, 1]} : vector<32x32xf32> to vector<32x16xf32>
    %38 = tpu.concatenate %36, %37 in 0 : vector<32x16xf32>, vector<32x16xf32> -> vector<64x16xf32>
    %39 = vector.shape_cast %38 : vector<64x16xf32> to vector<8x8x16xf32>
    "tpu.trace_start"() <{level = 10 : i32, message = "zqd,zkd->zqk"}> : () -> ()
    %cst_17 = arith.constant dense<0.000000e+00> : vector<8x8x8xf32>
    %40 = tpu.matmul %29, %34, %cst_17 {dimension_numbers = #tpu.dot_dimension_numbers<[2], [2], [1], [1], [0, 0, 0, 1, 1, 1], [0], [0]>} : vector<8x8x16xf32>, vector<8x8x16xf32>, vector<8x8x8xf32> -> vector<8x8x8xf32>
    "tpu.trace_stop"() : () -> ()
    %cst_18 = arith.constant dense<0xFF800000> : vector<8x8xf32>
    %41 = vector.multi_reduction <maximumf>, %40, %cst_18 [2] : vector<8x8x8xf32> to vector<8x8xf32>
    %42 = vector.shape_cast %41 : vector<8x8xf32> to vector<8x8x1xf32>
    %43 = vector.broadcast %42 : vector<8x8x1xf32> to vector<8x8x8xf32>
    %44 = arith.subf %40, %43 : vector<8x8x8xf32>
    %45 = math.exp %44 : vector<8x8x8xf32>
    %cst_19 = arith.constant dense<0.000000e+00> : vector<8x8xf32>
    %46 = vector.multi_reduction <add>, %45, %cst_19 [2] : vector<8x8x8xf32> to vector<8x8xf32>
    %47 = vector.shape_cast %46 : vector<8x8xf32> to vector<8x8x1xf32>
    %48 = vector.broadcast %47 : vector<8x8x1xf32> to vector<8x8x8xf32>
    %49 = arith.divf %45, %48 : vector<8x8x8xf32>
    "tpu.trace_start"() <{level = 10 : i32, message = "zqk,zkd->zqd"}> : () -> ()
    %cst_20 = arith.constant dense<0.000000e+00> : vector<8x8x16xf32>
    %50 = tpu.matmul %49, %39, %cst_20 {dimension_numbers = #tpu.dot_dimension_numbers<[2], [1], [1], [2], [0, 0, 0, 1, 1, 2], [0], [0]>} : vector<8x8x8xf32>, vector<8x8x16xf32>, vector<8x8x16xf32> -> vector<8x8x16xf32>
    "tpu.trace_stop"() : () -> ()
    %51 = vector.shape_cast %50 : vector<8x8x16xf32> to vector<2x32x16xf32>
    %52 = vector.extract_strided_slice %51 {offsets = [0, 0, 0], sizes = [1, 32, 16], strides = [1, 1, 1]} : vector<2x32x16xf32> to vector<1x32x16xf32>
    %53 = vector.shape_cast %52 : vector<1x32x16xf32> to vector<32x16xf32>
    %54 = vector.extract_strided_slice %51 {offsets = [1, 0, 0], sizes = [1, 32, 16], strides = [1, 1, 1]} : vector<2x32x16xf32> to vector<1x32x16xf32>
    %55 = vector.shape_cast %54 : vector<1x32x16xf32> to vector<32x16xf32>
    %56 = tpu.concatenate %53, %55 in 1 : vector<32x16xf32>, vector<32x16xf32> -> vector<32x32xf32>
    %cst_21 = arith.constant dense<0.000000e+00> : vector<32x32xf32>
    %57 = tpu.matmul %56, %7, %cst_21 {dimension_numbers = #tpu.dot_dimension_numbers<[1], [0], [0], [1], [0, 0, 1, 1], [], []>} : vector<32x32xf32>, vector<32x32xf32>, vector<32x32xf32> -> vector<32x32xf32>
    %58 = vector.broadcast %15 : vector<1x32xf32> to vector<32x32xf32>
    %59 = arith.addf %57, %58 : vector<32x32xf32>
    %60 = arith.addf %3, %59 : vector<32x32xf32>
    %cst_22 = arith.constant dense<0.000000e+00> : vector<32xf32>
    %61 = vector.multi_reduction <add>, %60, %cst_22 [1] : vector<32x32xf32> to vector<32xf32>
    %62 = vector.shape_cast %61 : vector<32xf32> to vector<32x1xf32>
    %cst_23 = arith.constant 3.200000e+01 : f32
    %63 = vector.broadcast %cst_23 : f32 to vector<32x1xf32>
    %64 = arith.divf %62, %63 : vector<32x1xf32>
    %65 = vector.broadcast %64 : vector<32x1xf32> to vector<32x32xf32>
    %66 = arith.subf %60, %65 : vector<32x32xf32>
    %67 = arith.mulf %66, %66 : vector<32x32xf32>
    %cst_24 = arith.constant dense<0.000000e+00> : vector<32xf32>
    %68 = vector.multi_reduction <add>, %67, %cst_24 [1] : vector<32x32xf32> to vector<32xf32>
    %69 = vector.shape_cast %68 : vector<32xf32> to vector<32x1xf32>
    %cst_25 = arith.constant 3.200000e+01 : f32
    %70 = vector.broadcast %cst_25 : f32 to vector<32x1xf32>
    %71 = arith.divf %69, %70 : vector<32x1xf32>
    %72 = vector.broadcast %64 : vector<32x1xf32> to vector<32x32xf32>
    %73 = arith.subf %60, %72 : vector<32x32xf32>
    %cst_26 = arith.constant 9.99999996E-13 : f32
    %74 = vector.broadcast %cst_26 : f32 to vector<32x1xf32>
    %75 = arith.addf %71, %74 : vector<32x1xf32>
    %76 = math.rsqrt %75 : vector<32x1xf32>
    %77 = vector.broadcast %76 : vector<32x1xf32> to vector<32x32xf32>
    %78 = arith.mulf %73, %77 : vector<32x32xf32>
    %79 = vector.broadcast %16 : vector<1x32xf32> to vector<32x32xf32>
    %80 = arith.mulf %78, %79 : vector<32x32xf32>
    %81 = vector.broadcast %17 : vector<1x32xf32> to vector<32x32xf32>
    %82 = arith.addf %80, %81 : vector<32x32xf32>
    %cst_27 = arith.constant dense<0.000000e+00> : vector<32x64xf32>
    %83 = tpu.matmul %82, %9, %cst_27 {dimension_numbers = #tpu.dot_dimension_numbers<[1], [0], [0], [1], [0, 0, 1, 1], [], []>} : vector<32x32xf32>, vector<32x64xf32>, vector<32x64xf32> -> vector<32x64xf32>
    %84 = vector.broadcast %18 : vector<1x64xf32> to vector<32x64xf32>
    %85 = arith.addf %83, %84 : vector<32x64xf32>
    %cst_28 = arith.constant 5.000000e-01 : f32
    %86 = vector.broadcast %cst_28 : f32 to vector<32x64xf32>
    %87 = arith.mulf %86, %85 : vector<32x64xf32>
    %cst_29 = arith.constant 1.41421354 : f32
    %88 = vector.broadcast %cst_29 : f32 to vector<32x64xf32>
    %89 = arith.divf %85, %88 : vector<32x64xf32>
    %90 = math.erf %89 : vector<32x64xf32>
    %cst_30 = arith.constant 1.000000e+00 : f32
    %91 = vector.broadcast %cst_30 : f32 to vector<32x64xf32>
    %92 = arith.addf %91, %90 : vector<32x64xf32>
    %93 = arith.mulf %87, %92 : vector<32x64xf32>
    %cst_31 = arith.constant dense<0.000000e+00> : vector<32x32xf32>
    %94 = tpu.matmul %93, %11, %cst_31 {dimension_numbers = #tpu.dot_dimension_numbers<[1], [0], [0], [1], [0, 0, 1, 1], [], []>} : vector<32x64xf32>, vector<64x32xf32>, vector<32x32xf32> -> vector<32x32xf32>
    %95 = vector.broadcast %19 : vector<1x32xf32> to vector<32x32xf32>
    %96 = arith.addf %94, %95 : vector<32x32xf32>
    %97 = arith.addf %82, %96 : vector<32x32xf32>
    %cst_32 = arith.constant dense<0.000000e+00> : vector<32xf32>
    %98 = vector.multi_reduction <add>, %97, %cst_32 [1] : vector<32x32xf32> to vector<32xf32>
    %99 = vector.shape_cast %98 : vector<32xf32> to vector<32x1xf32>
    %cst_33 = arith.constant 3.200000e+01 : f32
    %100 = vector.broadcast %cst_33 : f32 to vector<32x1xf32>
    %101 = arith.divf %99, %100 : vector<32x1xf32>
    %102 = vector.broadcast %101 : vector<32x1xf32> to vector<32x32xf32>
    %103 = arith.subf %97, %102 : vector<32x32xf32>
    %104 = arith.mulf %103, %103 : vector<32x32xf32>
    %cst_34 = arith.constant dense<0.000000e+00> : vector<32xf32>
    %105 = vector.multi_reduction <add>, %104, %cst_34 [1] : vector<32x32xf32> to vector<32xf32>
    %106 = vector.shape_cast %105 : vector<32xf32> to vector<32x1xf32>
    %cst_35 = arith.constant 3.200000e+01 : f32
    %107 = vector.broadcast %cst_35 : f32 to vector<32x1xf32>
    %108 = arith.divf %106, %107 : vector<32x1xf32>
    %109 = vector.broadcast %101 : vector<32x1xf32> to vector<32x32xf32>
    %110 = arith.subf %97, %109 : vector<32x32xf32>
    %cst_36 = arith.constant 9.99999996E-13 : f32
    %111 = vector.broadcast %cst_36 : f32 to vector<32x1xf32>
    %112 = arith.addf %108, %111 : vector<32x1xf32>
    %113 = math.rsqrt %112 : vector<32x1xf32>
    %114 = vector.broadcast %113 : vector<32x1xf32> to vector<32x32xf32>
    %115 = arith.mulf %110, %114 : vector<32x32xf32>
    %116 = vector.broadcast %20 : vector<1x32xf32> to vector<32x32xf32>
    %117 = arith.mulf %115, %116 : vector<32x32xf32>
    %118 = vector.broadcast %21 : vector<1x32xf32> to vector<32x32xf32>
    %119 = arith.addf %117, %118 : vector<32x32xf32>
    %c0_37 = arith.constant 0 : index
    %c0_38 = arith.constant 0 : index
    %120 = vector.load %arg11[%c0_37, %c0_38] : memref<32x32xf32, #tpu.memory_space<vmem>>, vector<32x32xf32>
    tpu.vector_store %arg11[%c0_37, %c0_38], %119 {strides = array<i32>} : memref<32x32xf32, #tpu.memory_space<vmem>>, vector<32x32xf32>,
    %c1_i32 = arith.constant 1 : i32
    %121 = arith.cmpi eq, %arg0, %c1_i32 : i32
    %122 = arith.extui %121 : i1 to i32
    %c0_i32_39 = arith.constant 0 : i32
    %123 = arith.cmpi ne, %122, %c0_i32_39 : i32
    scf.if %123 {
      %124 = vector.shape_cast %119 : vector<32x32xf32> to vector<4x8x32xf32>
      %125 = vector.extract_strided_slice %124 {offsets = [0, 0, 0], sizes = [4, 1, 32], strides = [1, 1, 1]} : vector<4x8x32xf32> to vector<4x1x32xf32>
      %126 = vector.shape_cast %125 : vector<4x1x32xf32> to vector<4x32xf32>
      %c0_40 = arith.constant 0 : index
      %c0_41 = arith.constant 0 : index
      %127 = vector.load %arg8[%c0_40, %c0_41] : memref<32x128xf32, #tpu.memory_space<vmem>>, vector<32x128xf32>
      %cst_42 = arith.constant dense<0.000000e+00> : vector<4x128xf32>
      %128 = tpu.matmul %126, %127, %cst_42 {dimension_numbers = #tpu.dot_dimension_numbers<[1], [0], [0], [1], [0, 0, 1, 1], [], []>} : vector<4x32xf32>, vector<32x128xf32>, vector<4x128xf32> -> vector<4x128xf32>
      %c0_43 = arith.constant 0 : index
      %c0_44 = arith.constant 0 : index
      %129 = vector.load %arg9[%c0_43, %c0_44] : memref<1x128xf32, #tpu.memory_space<vmem>>, vector<1x128xf32>
      %130 = vector.broadcast %129 : vector<1x128xf32> to vector<4x128xf32>
      %131 = arith.addf %128, %130 : vector<4x128xf32>
      %132 = arith.mulf %131, %131 : vector<4x128xf32>
      %cst_45 = arith.constant dense<0.000000e+00> : vector<4xf32>
      %133 = vector.multi_reduction <add>, %132, %cst_45 [1] : vector<4x128xf32> to vector<4xf32>
      %134 = vector.shape_cast %133 : vector<4xf32> to vector<4x1xf32>
      %cst_46 = arith.constant 1.000000e-24 : f32
      %135 = vector.broadcast %cst_46 : f32 to vector<4x1xf32>
      %136 = arith.maximumf %134, %135 : vector<4x1xf32>
      %137 = math.rsqrt %136 : vector<4x1xf32>
      %138 = vector.broadcast %137 : vector<4x1xf32> to vector<4x128xf32>
      %139 = arith.mulf %131, %138 : vector<4x128xf32>
      %c0_47 = arith.constant 0 : index
      %c0_48 = arith.constant 0 : index
      %140 = vector.load %arg10[%c0_47, %c0_48] : memref<4x128xf32, #tpu.memory_space<vmem>>, vector<4x128xf32>
      tpu.vector_store %arg10[%c0_47, %c0_48], %139 {strides = array<i32>} : memref<4x128xf32, #tpu.memory_space<vmem>>, vector<4x128xf32>,
    } else {
    }
    return
  }
  func.func @transform_0(%arg0: i32) -> (i32, i32) {
    %c0_i32 = arith.constant 0 : i32
    %c0_i32_0 = arith.constant 0 : i32
    %c0_i32_1 = arith.constant 0 : i32
    return %c0_i32, %c0_i32_0 : i32, i32
  }
  func.func @transform_1(%arg0: i32) -> (i32, i32) {
    %c0_i32 = arith.constant 0 : i32
    %c0_i32_0 = arith.constant 0 : i32
    %c0_i32_1 = arith.constant 0 : i32
    return %c0_i32, %c0_i32_0 : i32, i32
  }
  func.func @transform_2(%arg0: i32) -> (i32, i32, i32) {
    %c0_i32 = arith.constant 0 : i32
    %c0_i32_0 = arith.constant 0 : i32
    %c0_i32_1 = arith.constant 0 : i32
    return %arg0, %c0_i32, %c0_i32_0 : i32, i32, i32
  }
  func.func @transform_3(%arg0: i32) -> (i32, i32, i32) {
    %c0_i32 = arith.constant 0 : i32
    %c0_i32_0 = arith.constant 0 : i32
    %c0_i32_1 = arith.constant 0 : i32
    return %arg0, %c0_i32, %c0_i32_0 : i32, i32, i32
  }
  func.func @transform_4(%arg0: i32) -> (i32, i32, i32) {
    %c0_i32 = arith.constant 0 : i32
    %c0_i32_0 = arith.constant 0 : i32
    %c0_i32_1 = arith.constant 0 : i32
    return %arg0, %c0_i32, %c0_i32_0 : i32, i32, i32
  }
  func.func @transform_5(%arg0: i32) -> (i32, i32, i32) {
    %c0_i32 = arith.constant 0 : i32
    %c0_i32_0 = arith.constant 0 : i32
    %c0_i32_1 = arith.constant 0 : i32
    return %arg0, %c0_i32, %c0_i32_0 : i32, i32, i32
  }
  func.func @transform_6(%arg0: i32) -> (i32, i32, i32) {
    %c0_i32 = arith.constant 0 : i32
    %c0_i32_0 = arith.constant 0 : i32
    %c0_i32_1 = arith.constant 0 : i32
    return %arg0, %c0_i32, %c0_i32_0 : i32, i32, i32
  }
  func.func @transform_7(%arg0: i32) -> (i32, i32) {
    %c0_i32 = arith.constant 0 : i32
    %c0_i32_0 = arith.constant 0 : i32
    %c0_i32_1 = arith.constant 0 : i32
    return %c0_i32, %c0_i32_0 : i32, i32
  }
  func.func @transform_8(%arg0: i32) -> (i32, i32) {
    %c0_i32 = arith.constant 0 : i32
    %c0_i32_0 = arith.constant 0 : i32
    %c0_i32_1 = arith.constant 0 : i32
    return %c0_i32, %c0_i32_0 : i32, i32
  }
  func.func @transform_9(%arg0: i32) -> (i32, i32) {
    %c0_i32 = arith.constant 0 : i32
    %c0_i32_0 = arith.constant 0 : i32
    %c0_i32_1 = arith.constant 0 : i32
    return %c0_i32, %c0_i32_0 : i32, i32
  }
}

</mosaic_0001>

<bundles_post_ra>
// kernel: bert_encode.1
= control target key start
LH: loop header
LB: loop body
LE: loop exit
PB: predicated region body
PF: predicated region fallthrough
CT: control target
= control target key end

     0   :  { %14 = vsyncpa [#allocation4], 0  ;;  %s3148_s30 = smov 0   ;;  %s3529_s0 = inlined_call_operand.vmem [shape: f32[32,32], index: 0, kind: input, shape index: {}]   ;;  %s3530_s1 = inlined_call_operand.vmem [shape: f32[2,32], index: 1, kind: input, shape index: {}]   ;;  %s3531_s2 = inlined_call_operand.vmem [shape: f32[2,32,96], index: 2, kind: input, shape index: {}]   ;;  %s3532_s3 = inlined_call_operand.vmem [shape: f32[2,32,32], index: 3, kind: input, shape index: {}]   ;;  %s3533_s4 = inlined_call_operand.vmem [shape: f32[2,32,64], index: 4, kind: input, shape index: {}]   ;;  %s3534_s5 = inlined_call_operand.vmem [shape: f32[2,64,32], index: 5, kind: input, shape index: {}]   ;;  %s3535_s6 = inlined_call_operand.vmem [shape: f32[2,8,96], index: 6, kind: input, shape index: {}]   ;;  %s3536_s7 = inlined_call_operand.vmem [shape: f32[32,128], index: 7, kind: input, shape index: {}]   ;;  %s3537_s8 = inlined_call_operand.vmem [shape: f32[1,128], index: 8, kind: input, shape index: {}]   ;;  %s3538_s9 = inlined_call_operand.hbm [shape: f32[4,128], index: 9, kind: output, shape index: {}]  }
   0x1 LB: > { %s3154_s10 = sadd.s32 4294967295, %s3086_s30   ;;  %p2624_p0 = scmp.ge.s32.totalorder %s3086_s30, 1  ;;  %s3086_s30 = sphi %s3148_s30, %s20_s30  }
   0x2   : > { %p322_p1 = scmp.lt.s32.totalorder %s3086_s30, 3 }
   0x4   : > { %p323_p2 = pnand %p2624_p0, %p322_p1 }
   0x5   : > { %p372_p3 = scmp.lt.s32.totalorder (!%p323_p2), %s3154_s10, 1  ;;  %p2634_p4 = scmp.ne.s32.totalorder (!%p323_p2), %s3154_s10, 0 }
   0x6   : > { %326 = sbr.rel (%p323_p2) target bundleno = 3360 (0xd20), region = 56 }
   0xd   : > { %s373_s11 = scalar_select %p372_p3, %s3154_s10, 1 }
   0xe   : > { %399 = sbr.rel (%p2634_p4) target bundleno = 337 (0x151), region = 60  ;;  %v401_v0 = vld [vmem:[%s3529_s0] sm:$0xff] (!%p2634_p4)  ;;  %vm405_vm0 = vcmask (!%p2634_p4), 261120   ;;  %v403_v1 = vld [vmem:[%s3529_s0 + $0x10] sm:$0xff] (!%p2634_p4)  ;;  %v402_v2 = vld [vmem:[%s3529_s0 + $0x8] sm:$0xff] (!%p2634_p4)  ;;  %v459_v30 = vlaneseq (!%p2634_p4) }
   0xf   : > { %s2682_s12 = sshll.u32 %s373_s11, 5  ;;  %s2685_s13 = sshll.u32 %s373_s11, 6  ;;  %v406_v3 = vsel (!%p2634_p4), %vm405_vm0, %v401_v0, 0.0  ;;  %v412_v4 = vsel (!%p2634_p4), %vm405_vm0, %v403_v1, 0.0  ;;  %v404_v5 = vld [vmem:[%s3529_s0 + $0x18] sm:$0xff] (!%p2634_p4)  ;;  %v409_v6 = vsel (!%p2634_p4), %vm405_vm0, %v402_v2, 0.0 }
  0x10   : > { %s3163_s16 = scalar_lea.vmem %s3531_s2, %s2682_s12  ;;  %s3168_s19 = scalar_lea.vmem %s3532_s3, %s2682_s12  ;;  %407 = vadd.xlane.f32.xlu0 (!%p2634_p4), %v406_v3  ;;  %413 = vadd.xlane.f32.xlu1 (!%p2634_p4), %v412_v4  ;;  %v415_v7 = vsel (!%p2634_p4), %vm405_vm0, %v404_v5, 0.0  ;;  %v460_v36 = vshrl.u32 (!%p2634_p4), %v459_v30, 7  ;;  %v400_v42 = vld [vmem:[%s3530_s1] sm:$0x3] (!%p2634_p4) }
  0x11   : > { %s3173_s22 = scalar_lea.vmem %s3533_s4, %s2682_s12  ;;  %s3178_s25 = scalar_lea.vmem %s3534_s5, %s2685_s13 }
  0x12   : > { %s2633_s26 = sshll.u32 %s373_s11, 3  ;;  %v461_v41 = vsub.s32 (!%p2634_p4), 0, %v460_v36  ;;  %v469_v44 = vsub.s32 (!%p2634_p4), 1, %v460_v36 }
  0x13   : > { %s3183_s29 = scalar_lea.vmem %s3535_s6, %s2633_s26 }
  0x14   : > { %410 = vadd.xlane.f32.xlu0 (!%p2634_p4), %v409_v6  ;;  %416 = vadd.xlane.f32.xlu1 (!%p2634_p4), %v415_v7  ;;  %v462_v45 = vrot.slane (!%p2634_p4), %v400_v42, %v461_v41  ;;  %v470_v48 = vrot.slane (!%p2634_p4), %v400_v42, %v469_v44 }
  0x9d   : > { %v408_v8 = vpop.xlane.xlu0 %407  ;;  %v414_v9 = vpop.xlane.xlu1 %413 }
  0x9e   : > { %v419_v10 = vmul.f32 0.03125, %v408_v8  ;;  %v421_v11 = vmul.f32 0.03125, %v414_v9 }
  0xa0   : > { %v423_v12 = vsub.f32 %v401_v0, %v419_v10  ;;  %v425_v13 = vsub.f32 %v403_v1, %v421_v11 }
  0xa1   : > { %v411_v14 = vpop.xlane.xlu0 %410  ;;  %v417_v15 = vpop.xlane.xlu1 %416 }
  0xa2   : > { %v420_v16 = vmul.f32 0.03125, %v411_v14  ;;  %v422_v17 = vmul.f32 0.03125, %v417_v15  ;;  %v427_v18 = vmul.f32 %v423_v12, %v423_v12  ;;  %v429_v19 = vmul.f32 %v425_v13, %v425_v13 }
  0xa4   : > { %v424_v20 = vsub.f32 %v402_v2, %v420_v16  ;;  %v426_v21 = vsub.f32 %v404_v5, %v422_v17  ;;  %v431_v22 = vsel %vm405_vm0, %v427_v18, 0.0  ;;  %v437_v23 = vsel %vm405_vm0, %v429_v19, 0.0 }
  0xa5   : > { %432 = vadd.xlane.f32.xlu0 %v431_v22 }
  0xa6   : > { %v428_v24 = vmul.f32 %v424_v20, %v424_v20  ;;  %v430_v25 = vmul.f32 %v426_v21, %v426_v21 }
  0xa8   : > { %v434_v26 = vsel %vm405_vm0, %v428_v24, 0.0  ;;  %v440_v27 = vsel %vm405_vm0, %v430_v25, 0.0 }
  0xa9   : > { %438 = vadd.xlane.f32.xlu0 %v437_v23  ;;  %435 = vadd.xlane.f32.xlu1 %v434_v26 }
  0xad   : > { %441 = vadd.xlane.f32.xlu1 %v440_v27 }
 0x132   : > { %v433_v28 = vpop.xlane.xlu0 %432 }
 0x133   : > { %v443_v29 = vmul.f32 0.03125, %v433_v28 }
 0x135   : > { %v447_v31 = vadd.f32 1e-12, %v443_v29 }
 0x136   : > { %v436_v32 = vpop.xlane.xlu1 %435  ;;  %v439_v33 = vpop.xlane.xlu0 %438 }
 0x137   : > { %2984 = vrsqrt.f32 %v447_v31  ;;  %v444_v34 = vmul.f32 0.03125, %v436_v32  ;;  %v445_v35 = vmul.f32 0.03125, %v439_v33 }
 0x139   : > { %v448_v37 = vadd.f32 1e-12, %v444_v34  ;;  %v449_v38 = vadd.f32 1e-12, %v445_v35 }
 0x13a   : > { %v442_v39 = vpop.xlane.xlu1 %441 }
 0x13b   : > { %2986 = vrsqrt.f32 %v448_v37  ;;  %v446_v40 = vmul.f32 0.03125, %v442_v39 }
 0x13c   : > { %2988 = vrsqrt.f32 %v449_v38 }
 0x13d   : > { %v450_v43 = vadd.f32 1e-12, %v446_v40 }
 0x13f   : > { %2990 = vrsqrt.f32 %v450_v43 }
 0x141   : > { %v2985_v46 = vpop.eup %2984 }
 0x142   : > { %v455_v47 = vmul.f32 %v2985_v46, %v423_v12 }
 0x144   : > { %v463_v49 = vmul.f32 %v462_v45, %v455_v47 }
 0x145   : > { %v2987_v50 = vpop.eup %2986 }
 0x146   : > { %v2989_v51 = vpop.eup %2988  ;;  %v471_v52 = vadd.f32 %v470_v48, %v463_v49  ;;  %v456_v53 = vmul.f32 %v2987_v50, %v424_v20 }
 0x147   : > { %v457_v54 = vmul.f32 %v2989_v51, %v425_v13 }
 0x148   : > { %475 = vst.msk [vmem:[#allocation2] sm:$0xff] %vm405_vm0, %v471_v52  ;;  %v464_v55 = vmul.f32 %v462_v45, %v456_v53 }
 0x149   : > { %v2991_v56 = vpop.eup %2990  ;;  %v465_v57 = vmul.f32 %v462_v45, %v457_v54 }
 0x14a   : > { %v472_v58 = vadd.f32 %v470_v48, %v464_v55  ;;  %v458_v59 = vmul.f32 %v2991_v56, %v426_v21 }
 0x14b   : > { %v473_v60 = vadd.f32 %v470_v48, %v465_v57 }
 0x14c   : > { %476 = vst.msk [vmem:[#allocation2 + $0x8] sm:$0xff] %vm405_vm0, %v472_v58  ;;  %v466_v61 = vmul.f32 %v462_v45, %v458_v59 }
 0x14d   : > { %477 = vst.msk [vmem:[#allocation2 + $0x10] sm:$0xff] %vm405_vm0, %v473_v60 }
 0x14e   : > { %v474_v62 = vadd.f32 %v470_v48, %v466_v61 }
 0x150   : > { %478 = vst.msk [vmem:[#allocation2 + $0x18] sm:$0xff] %vm405_vm0, %v474_v62 }
 0x151 PF: > { %v483_v63 = vld [vmem:[%s3163_s16] sm:$0xff]  ;;  %v484_v0 = vld [vmem:[%s3163_s16 + $0x8] sm:$0xff]  ;;  %v485_v1 = vld [vmem:[%s3163_s16 + $0x10] sm:$0xff]  ;;  %vm508_vm1 = vcmask 261120   ;;  %v504_v9 = vlaneseq  ;;  %v3088_v13 = vmov 0.0   ;;  %vm3089_vm2 = vmmov 0  }
 0x152   : > { %v2914_v2 = vpack.c.bf16 %v484_v0, %v483_v63  ;;  %v486_v3 = vld [vmem:[%s3163_s16 + $0x18] sm:$0xff]  ;;  %v3217_v4 = vld [vmem:[#allocation2] sm:$0xff]  ;;  %2778 = vmatprep.subr.mxu1 %v3088_v13  ;;  %2780 = vmatprep.mubr.msk.f32.mxu1 %vm3089_vm2, %v3088_v13  ;;  %s3090_s16 = smov 112   ;;  %s3091_s24 = smov 96   ;;  %vm620_vm3 = vcmask 130048   ;;  %vm1227_vm4 = vcmask 64512  }
 0x153   : > { %v2918_v5 = vpack.c.bf16 %v486_v3, %v485_v1  ;;  %2767 = vmatprep.mubr.msk.f32.mxu0 %vm508_vm1, %v3217_v4  ;;  %v3221_v6 = vld [vmem:[#allocation2 + $0x8] sm:$0xff]  ;;  %v3233_v10 = vshrl.u32 %v504_v9, 7  ;;  %v3237_v12 = vld [vmem:[%s3183_s29] sm:$0xff]  ;;  %s3092_s26 = smov 64   ;;  %s3093_s27 = smov 16   ;;  %vm2244_vm5 = vcmask 523264  }
 0x154   : > { %2915 = vmatprep.subr.bf16.mxu0 %v2914_v2  ;;  %v3223_v7 = vld [vmem:[#allocation2 + $0x10] sm:$0xff]  ;;  %p2675_p5 = scmp.ne.s32.totalorder %s3154_s10, 1 }
 0x155   : > { %2917 = vmatpush3.bf16.msra.mxu0 %v2914_v2  ;;  %v506_v11 = vsub.s32 0, %v3233_v10  ;;  %vm3095_vm6 = vmmov (!%p2675_p5), 0   ;;  %vm2438_vm7 = vcmask (!%p2675_p5), 1041409   ;;  %vm2441_vm8 = vcmask (!%p2675_p5), 1042434  }
 0x156   : > { %2919 = vmatprep.subr.bf16.mxu0 %v2918_v5  ;;  %vm2444_vm9 = vcmask (!%p2675_p5), 1043459   ;;  %vm2519_vm10 = vcmask (!%p2675_p5), 1043456  }
 0x157   : > { %v3229_v8 = vld [vmem:[#allocation2 + $0x18] sm:$0xff]  ;;  %v507_v14 = vrot.slane %v3237_v12, %v506_v11 }
 0x159   : > { %2921 = vmatpush3.bf16.msra.mxu0 %v2918_v5 }
 0x15a   : > { %2773 = vmatprep.subr.mxu0 %v3088_v13 }
 0x15c   : > { %2768 = vmatmul.mubr.msk.f32.vlgmr.msra.gmra.mrb[0].mxu0 %vm508_vm1, %v3221_v6 }
 0x15d   : > { %2770 = vmatprep.mubr.msk.f32.mxu0 %vm508_vm1, %v3223_v7 }
 0x160   : > { %2771 = vmatmul.mubr.msk.f32.gmra.mrb[2].mxu0 %vm508_vm1, %v3229_v8 }
 0x161   : > { %2775 = vmatprep.mubr.msk.f32.mxu0 %vm3089_vm2, %v3088_v13 }
 0x22f   : > { %v2769_v15 = vpop.f32.mrb[0].mxu0 }
 0x230   : > { %v587_v16 = vpop.f32.mrb[1].mxu0  ;;  %v3249_v20 = vadd.f32 %v2769_v15, %v507_v14 }
 0x231   : > { %v3246_v17 = vadd.f32 %v587_v16, %v507_v14 }
 0x233   : > { %v2772_v18 = vpop.f32.mrb[2].mxu0  ;;  %610 = vrot.lane.b32.xlu0 %v3246_v17, %s3090_s16 }
 0x234   : > { %v597_v19 = vpop.f32.mrb[3].mxu0  ;;  %v3255_v22 = vadd.f32 %v2772_v18, %v507_v14 }
 0x235   : > { %v3251_v21 = vadd.f32 %v597_v19, %v507_v14 }
 0x237   : > { %614 = vrot.lane.b32.xlu1 %v3251_v21, %s3090_s16  ;;  %612 = vrot.lane.b32.xlu0 %v3249_v20, %s3090_s16 }
 0x23b   : > { %616 = vrot.lane.b32.xlu1 %v3255_v22, %s3090_s16  ;;  %618 = vrot.lane.b32.xlu0 %v3246_v17, %s3091_s24 }
 0x23f   : > { %695 = vrot.lane.b32.xlu1 %v3249_v20, %s3091_s24  ;;  %771 = vrot.lane.b32.xlu0 %v3251_v21, %s3091_s24 }
 0x243   : > { %847 = vrot.lane.b32.xlu1 %v3255_v22, %s3091_s24 }
 0x2a5   : > { %v3262_v23 = vpop.permute.xlu0 %610 }
 0x2a6   : > { %923 = vrot.lane.b32.xlu0 %v3262_v23, %s3091_s24 }
 0x2a9   : > { %v3265_v24 = vpop.permute.xlu1 %614  ;;  %v3267_v25 = vpop.permute.xlu0 %612 }
 0x2aa   : > { %1075 = vrot.lane.b32.xlu0 %v3265_v24, %s3091_s24  ;;  %999 = vrot.lane.b32.xlu1 %v3267_v25, %s3091_s24 }
 0x2ad   : > { %v3271_v26 = vpop.permute.xlu1 %616  ;;  %v619_v27 = vpop.permute.xlu0 %618 }
 0x2ae   : > { %1151 = vrot.lane.b32.xlu1 %v3271_v26, %s3091_s24  ;;  %2774 = vmatpush3.xpose.msk.msra.mxu0 %vm620_vm3, %v619_v27 }
 0x2af   : > { %2788 = vmatprep.subr.mxu0 %v3088_v13 }
 0x2b1   : > { %v696_v28 = vpop.permute.xlu1 %695  ;;  %2776 = vmatmul.mubr.msk.f32.vlgmr.msra.gmra.mrb[4].mxu0 %vm620_vm3, %v3246_v17  ;;  %v772_v29 = vpop.permute.xlu0 %771 }
 0x2b2   : > { %2779 = vmatpush3.xpose.msk.msra.mxu1 %vm620_vm3, %v696_v28  ;;  %2790 = vmatprep.mubr.msk.f32.mxu0 %vm3089_vm2, %v3088_v13 }
 0x2b3   : > { %2783 = vmatprep.subr.mxu1 %v3088_v13 }
 0x2b5   : > { %2781 = vmatmul.mubr.msk.f32.vlgmr.msra.gmra.mrb[0].mxu1 %vm620_vm3, %v3249_v20  ;;  %v848_v30 = vpop.permute.xlu1 %847 }
 0x2b6   : > { %2784 = vmatpush3.xpose.msk.msra.mxu1 %vm620_vm3, %v772_v29  ;;  %2789 = vmatpush3.xpose.msk.msra.mxu0 %vm620_vm3, %v848_v30 }
 0x2b7   : > { %2785 = vmatprep.mubr.msk.f32.mxu1 %vm3089_vm2, %v3088_v13  ;;  %2793 = vmatprep.subr.mxu1 %v3088_v13 }
 0x2b8   : > { %2798 = vmatprep.subr.mxu0 %v3088_v13 }
 0x2b9   : > { %2786 = vmatmul.mubr.msk.f32.vlgmr.msra.gmra.mrb[2].mxu1 %vm620_vm3, %v3251_v21  ;;  %2791 = vmatmul.mubr.msk.f32.vlgmr.msra.gmra.mrb[6].mxu0 %vm620_vm3, %v3255_v22 }
 0x2ba   : > { %2795 = vmatprep.mubr.msk.f32.mxu1 %vm3089_vm2, %v3088_v13  ;;  %2800 = vmatprep.mubr.msk.f32.mxu0 %vm3089_vm2, %v3088_v13 }
 0x318   : > { %v924_v31 = vpop.permute.xlu0 %923 }
 0x319   : > { %2794 = vmatpush3.xpose.msk.msra.mxu1 %vm620_vm3, %v924_v31 }
 0x31a   : > { %2803 = vmatprep.subr.mxu1 %v3088_v13 }
 0x31c   : > { %v1000_v32 = vpop.permute.xlu1 %999  ;;  %2796 = vmatmul.mubr.msk.f32.vlgmr.msra.gmra.mrb[4].mxu1 %vm620_vm3, %v3262_v23  ;;  %v1076_v33 = vpop.permute.xlu0 %1075 }
 0x31d   : > { %2799 = vmatpush3.xpose.msk.msra.mxu0 %vm620_vm3, %v1000_v32  ;;  %2804 = vmatpush3.xpose.msk.msra.mxu1 %vm620_vm3, %v1076_v33 }
 0x31e   : > { %2805 = vmatprep.mubr.msk.f32.mxu1 %vm3089_vm2, %v3088_v13  ;;  %2808 = vmatprep.subr.mxu0 %v3088_v13 }
 0x31f   : > { %2813 = vmatprep.subr.mxu1 %v3088_v13 }
 0x320   : > { %v1152_v34 = vpop.permute.xlu1 %1151  ;;  %2801 = vmatmul.mubr.msk.f32.vlgmr.msra.gmra.mrb[8].mxu0 %vm620_vm3, %v3267_v25  ;;  %2806 = vmatmul.mubr.msk.f32.vlgmr.msra.gmra.mrb[6].mxu1 %vm620_vm3, %v3265_v24 }
 0x321   : > { %2809 = vmatpush3.xpose.msk.msra.mxu0 %vm620_vm3, %v1152_v34  ;;  %2810 = vmatprep.mubr.msk.f32.mxu0 %vm3089_vm2, %v3088_v13 }
 0x322   : > { %2818 = vmatprep.subr.mxu0 %v3088_v13  ;;  %2815 = vmatprep.mubr.msk.f32.mxu1 %vm3089_vm2, %v3088_v13 }
 0x324   : > { %2811 = vmatmul.mubr.msk.f32.vlgmr.msra.gmra.mrb[10].mxu0 %vm620_vm3, %v3271_v26 }
 0x325   : > { %2820 = vmatprep.mubr.msk.f32.mxu0 %vm3089_vm2, %v3088_v13 }
 0x384   : > { %v691_v35 = vpop.f32.mrb[4].mxu0 }
 0x385   : > { %v2777_v36 = vpop.f32.mrb[5].mxu0  ;;  %v1228_v37 = vsel %vm1227_vm4, %v691_v35, -inf }
 0x386   : > { %1229 = vmax.xlane.f32.xlu0 %v1228_v37 }
 0x388   : > { %v767_v38 = vpop.f32.mrb[0].mxu1 }
 0x389   : > { %v2782_v39 = vpop.f32.mrb[1].mxu1  ;;  %v1231_v40 = vsel %vm1227_vm4, %v767_v38, -inf }
 0x38a   : > { %1232 = vmax.xlane.f32.xlu1 %v1231_v40 }
 0x38c   : > { %v843_v41 = vpop.f32.mrb[2].mxu1  ;;  %v919_v42 = vpop.f32.mrb[6].mxu0 }
 0x38d   : > { %v2787_v43 = vpop.f32.mrb[3].mxu1  ;;  %v2792_v44 = vpop.f32.mrb[7].mxu0  ;;  %v1234_v45 = vsel %vm1227_vm4, %v843_v41, -inf  ;;  %v1237_v46 = vsel %vm1227_vm4, %v919_v42, -inf }
 0x38e   : > { %1235 = vmax.xlane.f32.xlu0 %v1234_v45 }
 0x392   : > { %1238 = vmax.xlane.f32.xlu0 %v1237_v46 }
 0x3ef   : > { %v995_v47 = vpop.f32.mrb[4].mxu1 }
 0x3f0   : > { %v2797_v48 = vpop.f32.mrb[5].mxu1  ;;  %v1240_v49 = vsel %vm1227_vm4, %v995_v47, -inf }
 0x3f1   : > { %1241 = vmax.xlane.f32.xlu1 %v1240_v49 }
 0x3f3   : > { %v1071_v50 = vpop.f32.mrb[8].mxu0  ;;  %v1147_v51 = vpop.f32.mrb[6].mxu1 }
 0x3f4   : > { %v2802_v52 = vpop.f32.mrb[9].mxu0  ;;  %v2807_v53 = vpop.f32.mrb[7].mxu1  ;;  %v1243_v54 = vsel %vm1227_vm4, %v1071_v50, -inf  ;;  %v1246_v55 = vsel %vm1227_vm4, %v1147_v51, -inf }
 0x3f5   : > { %1244 = vmax.xlane.f32.xlu0 %v1243_v54  ;;  %1247 = vmax.xlane.f32.xlu1 %v1246_v55 }
 0x3f7   : > { %v1223_v56 = vpop.f32.mrb[10].mxu0 }
 0x3f8   : > { %v2812_v57 = vpop.f32.mrb[11].mxu0  ;;  %v1249_v58 = vsel %vm1227_vm4, %v1223_v56, -inf }
 0x3f9   : > { %1250 = vmax.xlane.f32.xlu0 %v1249_v58 }
 0x406   : > { %1316 = vrot.lane.b32.xlu1 %v3246_v17, %s3092_s26 }
 0x40a   : > { %1468 = vrot.lane.b32.xlu1 %v3251_v21, %s3092_s26 }
 0x40e   : > { %1544 = vrot.lane.b32.xlu1 %v3255_v22, %s3092_s26 }
 0x40f   : > { %1392 = vrot.lane.b32.xlu0 %v3249_v20, %s3092_s26 }
 0x412   : > { %1696 = vrot.lane.b32.xlu1 %v3267_v25, %s3092_s26 }
 0x413   : > { %1620 = vrot.lane.b32.xlu0 %v3262_v23, %s3092_s26  ;;  %v1230_v59 = vpop.xlane.xlu0 %1229 }
 0x414   : > { %v1252_v63 = vsub.f32 %v691_v35, %v1230_v59 }
 0x416   : > { %v1260_v3 = vmul.f32 1.442695, %v1252_v63 }
 0x417   : > { %v1233_v60 = vpop.xlane.xlu1 %1232 }
 0x418   : > { %v1253_v62 = vsub.f32 %v767_v38, %v1233_v60 }
 0x41a   : > { %v1262_v1 = vmul.f32 1.442695, %v1253_v62 }
 0x41b   : > { %v1236_v61 = vpop.xlane.xlu0 %1235 }
 0x41c   : > { %2992 = vpow2.f32 %v1262_v1  ;;  %v1254_v5 = vsub.f32 %v843_v41, %v1236_v61 }
 0x41d   : > { %2994 = vpow2.f32 %v1260_v3 }
 0x41e   : > { %v1264_v11 = vmul.f32 1.442695, %v1254_v5 }
 0x41f   : > { %v1239_v0 = vpop.xlane.xlu0 %1238 }
 0x420   : > { %v1255_v2 = vsub.f32 %v919_v42, %v1239_v0 }
 0x422   : > { %v1266_v9 = vmul.f32 1.442695, %v1255_v2 }
 0x424   : > { %2996 = vpow2.f32 %v1266_v9 }
 0x425   : > { %2998 = vpow2.f32 %v1264_v11 }
 0x426   : > { %v2993_v14 = vpop.eup %2992 }
 0x427   : > { %v3342_v15 = vpop.eup %2994  ;;  %v1279_v16 = vsel %vm1227_vm4, %v2993_v14, 0.0 }
 0x428   : > { %v1276_v18 = vsel %vm1227_vm4, %v3342_v15, 0.0 }
 0x42e   : > { %v3345_v17 = vpop.eup %2996 }
 0x42f   : > { %v1285_v19 = vsel %vm1227_vm4, %v3345_v17, 0.0  ;;  %v3351_v20 = vpop.eup %2998 }
 0x430   : > { %v1282_v21 = vsel %vm1227_vm4, %v3351_v20, 0.0 }
 0x432   : > { %1280 = vadd.xlane.f32.xlu0 %v1279_v16 }
 0x436   : > { %1277 = vadd.xlane.f32.xlu1 %v1276_v18  ;;  %1286 = vadd.xlane.f32.xlu0 %v1285_v19  ;;  %v488_v18 = vld [vmem:[%s3168_s19 + $0x8] sm:$0xff] }
 0x43a   : > { %1283 = vadd.xlane.f32.xlu1 %v1282_v21 }
 0x47e   : > { %v1242_v22 = vpop.xlane.xlu1 %1241 }
 0x47f   : > { %v1256_v23 = vsub.f32 %v995_v47, %v1242_v22 }
 0x481   : > { %v1268_v25 = vmul.f32 1.442695, %v1256_v23 }
 0x482   : > { %v1248_v27 = vpop.xlane.xlu1 %1247  ;;  %v1245_v28 = vpop.xlane.xlu0 %1244 }
 0x483   : > { %3000 = vpow2.f32 %v1268_v25  ;;  %v1258_v29 = vsub.f32 %v1147_v51, %v1248_v27  ;;  %v1257_v30 = vsub.f32 %v1071_v50, %v1245_v28 }
 0x485   : > { %v1272_v31 = vmul.f32 1.442695, %v1258_v29  ;;  %v1270_v32 = vmul.f32 1.442695, %v1257_v30  ;;  %v490_v30 = vld [vmem:[%s3168_s19 + $0x18] sm:$0xff] }
 0x486   : > { %v1317_v33 = vpop.permute.xlu1 %1316  ;;  %v1251_v34 = vpop.xlane.xlu0 %1250 }
 0x487   : > { %3002 = vpow2.f32 %v1272_v31  ;;  %v1259_v35 = vsub.f32 %v1223_v56, %v1251_v34  ;;  %2814 = vmatpush3.msra.mxu1 %v1317_v33 }
 0x488   : > { %3004 = vpow2.f32 %v1270_v32  ;;  %2823 = vmatprep.subr.mxu1 %v3088_v13 }
 0x489   : > { %v1274_v36 = vmul.f32 1.442695, %v1259_v35 }
 0x48a   : > { %v1393_v37 = vpop.permute.xlu0 %1392  ;;  %v1469_v46 = vpop.permute.xlu1 %1468 }
 0x48b   : > { %3006 = vpow2.f32 %v1274_v36  ;;  %2819 = vmatpush3.msra.mxu0 %v1393_v37 }
 0x48c   : > { %2828 = vmatprep.subr.mxu0 %v3088_v13 }
 0x48d   : > { %v3001_v38 = vpop.eup %3000 }
 0x48e   : > { %v1288_v39 = vsel %vm1227_vm4, %v3001_v38, 0.0  ;;  %v1545_v47 = vpop.permute.xlu1 %1544  ;;  %v1621_v48 = vpop.permute.xlu0 %1620 }
 0x48f   : > { %1289 = vadd.xlane.f32.xlu1 %v1288_v39 }
 0x491   : > { %v3358_v40 = vpop.eup %3002 }
 0x492   : > { %v3360_v41 = vpop.eup %3004  ;;  %v1294_v42 = vsel %vm1227_vm4, %v3358_v40, 0.0  ;;  %v1697_v49 = vpop.permute.xlu1 %1696 }
 0x493   : > { %1295 = vadd.xlane.f32.xlu1 %v1294_v42  ;;  %v1291_v43 = vsel %vm1227_vm4, %v3360_v41, 0.0 }
 0x494   : > { %1292 = vadd.xlane.f32.xlu0 %v1291_v43 }
 0x495   : > { %v3366_v44 = vpop.eup %3006 }
 0x496   : > { %v1297_v45 = vsel %vm1227_vm4, %v3366_v44, 0.0 }
 0x498   : > { %1298 = vadd.xlane.f32.xlu0 %v1297_v45 }
 0x4a4   : > { %1848 = vrot.lane.b32.xlu1 %v3271_v26, %s3092_s26 }
 0x4ae   : > { %1772 = vrot.lane.b32.xlu0 %v3265_v24, %s3092_s26 }
 0x4bf   : > { %v1281_v50 = vpop.xlane.xlu0 %1280 }
 0x4c0   : > { %3008 = vrcp.f32 %v1281_v50 }
 0x4c3   : > { %v1278_v51 = vpop.xlane.xlu1 %1277  ;;  %v1287_v52 = vpop.xlane.xlu0 %1286 }
 0x4c4   : > { %3010 = vrcp.f32 %v1278_v51 }
 0x4c5   : > { %3012 = vrcp.f32 %v1287_v52 }
 0x4c7   : > { %v1284_v53 = vpop.xlane.xlu1 %1283 }
 0x4c8   : > { %3014 = vrcp.f32 %v1284_v53 }
 0x4ca   : > { %v3009_v54 = vpop.eup %3008 }
 0x4cb   : > { %v1303_v55 = vmul.f32 %v3009_v54, %v2993_v14 }
 0x4cd   : > { %2821 = vmatmul.mubr.msk.f32.vlgmr.msra.gmra.mrb[12].mxu0 %vm1227_vm4, %v1303_v55 }
 0x4ce   : > { %v3011_v26 = vpop.eup %3010  ;;  %2829 = vmatpush3.msra.mxu0 %v1545_v47  ;;  %2830 = vmatprep.mubr.msk.f32.mxu0 %vm3089_vm2, %v3088_v13 }
 0x4cf   : > { %v3013_v24 = vpop.eup %3012  ;;  %v1301_v56 = vmul.f32 %v3011_v26, %v3342_v15  ;;  %2838 = vmatprep.subr.mxu0 %v3088_v13 }
 0x4d0   : > { %v1307_v57 = vmul.f32 %v3013_v24, %v3345_v17  ;;  %v487_v17 = vld [vmem:[%s3168_s19] sm:$0xff] }
 0x4d1   : > { %2816 = vmatmul.mubr.msk.f32.vlgmr.msra.gmra.mrb[8].mxu1 %vm1227_vm4, %v1301_v56  ;;  %v2922_v19 = vpack.c.bf16 %v488_v18, %v487_v17 }
 0x4d2   : > { %v3015_v58 = vpop.eup %3014  ;;  %2824 = vmatpush3.msra.mxu1 %v1469_v46  ;;  %2831 = vmatmul.mubr.msk.f32.vlgmr.msra.gmra.mrb[14].mxu0 %vm1227_vm4, %v1307_v57 }
 0x4d3   : > { %v1305_v59 = vmul.f32 %v3015_v58, %v3351_v20  ;;  %2839 = vmatpush3.msra.mxu0 %v1697_v49  ;;  %2825 = vmatprep.mubr.msk.f32.mxu1 %vm3089_vm2, %v3088_v13 }
 0x4d4   : > { %2833 = vmatprep.subr.mxu1 %v3088_v13  ;;  %2840 = vmatprep.mubr.msk.f32.mxu0 %vm3089_vm2, %v3088_v13 }
 0x4d5   : > { %2826 = vmatmul.mubr.msk.f32.vlgmr.msra.gmra.mrb[10].mxu1 %vm1227_vm4, %v1305_v59  ;;  %2848 = vmatprep.subr.mxu0 %v3088_v13 }
 0x4d6   : > { %2834 = vmatpush3.msra.mxu1 %v1621_v48  ;;  %2835 = vmatprep.mubr.msk.f32.mxu1 %vm3089_vm2, %v3088_v13  ;;  %v1946_v48 = vsub.s32 1, %v3233_v10 }
 0x4d7   : > { %2843 = vmatprep.subr.mxu1 %v3088_v13 }
 0x4d8   : > { %v1947_v49 = vrot.slane %v3237_v12, %v1946_v48 }
 0x51c   : > { %v1290_v60 = vpop.xlane.xlu1 %1289 }
 0x51d   : > { %3016 = vrcp.f32 %v1290_v60 }
 0x520   : > { %v1296_v61 = vpop.xlane.xlu1 %1295 }
 0x521   : > { %3018 = vrcp.f32 %v1296_v61  ;;  %v1293_v62 = vpop.xlane.xlu0 %1292 }
 0x522   : > { %3020 = vrcp.f32 %v1293_v62 }
 0x524   : > { %v1849_v14 = vpop.permute.xlu1 %1848 }
 0x525   : > { %v1299_v63 = vpop.xlane.xlu0 %1298 }
 0x526   : > { %3022 = vrcp.f32 %v1299_v63 }
 0x527   : > { %v3017_v0 = vpop.eup %3016 }
 0x528   : > { %v1309_v1 = vmul.f32 %v3017_v0, %v3001_v38 }
 0x529   : > { %v1773_v2 = vpop.permute.xlu0 %1772 }
 0x52a   : > { %2836 = vmatmul.mubr.msk.f32.vlgmr.msra.gmra.mrb[12].mxu1 %vm1227_vm4, %v1309_v1 }
 0x52b   : > { %v3019_v3 = vpop.eup %3018  ;;  %2844 = vmatpush3.msra.mxu1 %v1773_v2  ;;  %2845 = vmatprep.mubr.msk.f32.mxu1 %vm3089_vm2, %v3088_v13 }
 0x52c   : > { %v3021_v5 = vpop.eup %3020  ;;  %v1313_v9 = vmul.f32 %v3019_v3, %v3358_v40  ;;  %2923 = vmatprep.subr.bf16.mxu1 %v2922_v19 }
 0x52d   : > { %v1311_v11 = vmul.f32 %v3021_v5, %v3360_v41 }
 0x52e   : > { %2846 = vmatmul.mubr.msk.f32.vlgmr.msra.gmra.mrb[14].mxu1 %vm1227_vm4, %v1313_v9 }
 0x52f   : > { %2841 = vmatmul.mubr.msk.f32.vlgmr.msra.gmra.mrb[16].mxu0 %vm1227_vm4, %v1311_v11  ;;  %2925 = vmatpush3.bf16.msra.mxu1 %v2922_v19 }
 0x530   : > { %v3023_v15 = vpop.eup %3022  ;;  %2849 = vmatpush3.msra.mxu0 %v1849_v14  ;;  %2850 = vmatprep.mubr.msk.f32.mxu0 %vm3089_vm2, %v3088_v13  ;;  %v489_v13 = vld [vmem:[%s3168_s19 + $0x10] sm:$0xff] }
 0x531   : > { %v1315_v16 = vmul.f32 %v3023_v15, %v3366_v44  ;;  %v2926_v31 = vpack.c.bf16 %v490_v30, %v489_v13 }
 0x533   : > { %2851 = vmatmul.mubr.msk.f32.vlgmr.msra.gmra.mrb[18].mxu0 %vm1227_vm4, %v1315_v16  ;;  %2927 = vmatprep.subr.bf16.mxu1 %v2926_v31 }
 0x534   : > { %2929 = vmatpush3.bf16.msra.mxu1 %v2926_v31 }
 0x5a0   : > { %v1464_v20 = vpop.f32.mrb[12].mxu0 }
 0x5a1   : > { %v2822_v21 = vpop.f32.mrb[13].mxu0 }
 0x5a4   : > { %v1388_v22 = vpop.f32.mrb[8].mxu1 }
 0x5a5   : > { %v1616_v23 = vpop.f32.mrb[14].mxu0  ;;  %v2817_v25 = vpop.f32.mrb[9].mxu1 }
 0x5a6   : > { %v2832_v27 = vpop.f32.mrb[15].mxu0  ;;  %v492_v25 = vld [vmem:[%s3173_s22 + $0x8] sm:$0xff] }
 0x5a8   : > { %v1540_v28 = vpop.f32.mrb[10].mxu1 }
 0x5a9   : > { %v2827_v29 = vpop.f32.mrb[11].mxu1 }
 0x5aa   : > { %v494_v29 = vld [vmem:[%s3173_s22 + $0x18] sm:$0xff] }
 0x5fd   : > { %v1692_v32 = vpop.f32.mrb[12].mxu1 }
 0x5fe   : > { %1928 = vrot.lane.b32.xlu0 %v1692_v32, %s3093_s27  ;;  %v2837_v33 = vpop.f32.mrb[13].mxu1 }
 0x601   : > { %v1844_v34 = vpop.f32.mrb[14].mxu1 }
 0x602   : > { %v1768_v35 = vpop.f32.mrb[16].mxu0  ;;  %1932 = vrot.lane.b32.xlu0 %v1844_v34, %s3093_s27  ;;  %v2847_v36 = vpop.f32.mrb[15].mxu1 }
 0x603   : > { %1930 = vrot.lane.b32.xlu1 %v1768_v35, %s3093_s27  ;;  %v2842_v37 = vpop.f32.mrb[17].mxu0 }
 0x606   : > { %v1920_v38 = vpop.f32.mrb[18].mxu0 }
 0x607   : > { %1934 = vrot.lane.b32.xlu1 %v1920_v38, %s3093_s27  ;;  %v2852_v39 = vpop.f32.mrb[19].mxu0 }
 0x670   : > { %v1929_v40 = vpop.permute.xlu0 %1928 }
 0x671   : > { %v1940_v41 = vsel %vm620_vm3, %v1388_v22, %v1929_v40 }
 0x672   : > { %2861 = vmatprep.mubr.msk.f32.mxu1 %vm508_vm1, %v1940_v41  ;;  %v2104_v41 = vsub.s32 2, %v3233_v10 }
 0x674   : > { %v1933_v42 = vpop.permute.xlu0 %1932 }
 0x675   : > { %v1931_v43 = vpop.permute.xlu1 %1930  ;;  %v1942_v44 = vsel %vm620_vm3, %v1540_v28, %v1933_v42  ;;  %v493_v28 = vld [vmem:[%s3173_s22 + $0x10] sm:$0xff] }
 0x676   : > { %v1941_v45 = vsel %vm620_vm3, %v1464_v20, %v1931_v43  ;;  %v2934_v13 = vpack.c.bf16 %v494_v29, %v493_v28  ;;  %v2112_v43 = vsub.s32 3, %v3233_v10 }
 0x677   : > { %2862 = vmatmul.mubr.msk.f32.vlgmr.msra.gmra.mrb[16].mxu1 %vm508_vm1, %v1941_v45 }
 0x678   : > { %2864 = vmatprep.mubr.msk.f32.mxu1 %vm508_vm1, %v1942_v44  ;;  %v2105_v44 = vrot.slane %v3237_v12, %v2104_v41 }
 0x679   : > { %v1935_v46 = vpop.permute.xlu1 %1934 }
 0x67a   : > { %v1943_v47 = vsel %vm620_vm3, %v1616_v23, %v1935_v46  ;;  %v491_v23 = vld [vmem:[%s3173_s22] sm:$0xff] }
 0x67b   : > { %2865 = vmatmul.mubr.msk.f32.gmra.mrb[18].mxu1 %vm508_vm1, %v1943_v47  ;;  %v2930_v27 = vpack.c.bf16 %v492_v25, %v491_v23 }
 0x67d   : > { %2931 = vmatprep.subr.bf16.mxu0 %v2930_v27 }
 0x67e   : > { %2933 = vmatpush3.bf16.msra.mxu0 %v2930_v27 }
 0x67f   : > { %2935 = vmatprep.subr.bf16.mxu0 %v2934_v13 }
 0x682   : > { %2937 = vmatpush3.bf16.msra.mxu0 %v2934_v13 }
 0x74a   : > { %v2863_v50 = vpop.f32.mrb[16].mxu1 }
 0x74b   : > { %v2032_v51 = vadd.f32 %v2863_v50, %v1947_v49  ;;  %v2026_v52 = vpop.f32.mrb[17].mxu1 }
 0x74c   : > { %v2027_v53 = vadd.f32 %v2026_v52, %v1947_v49 }
 0x74d   : > { %v2046_v54 = vadd.f32 %v2032_v51, %v3221_v6 }
 0x74e   : > { %v2866_v55 = vpop.f32.mrb[18].mxu1  ;;  %v2045_v26 = vadd.f32 %v2027_v53, %v3217_v4 }
 0x74f   : > { %v2036_v24 = vpop.f32.mrb[19].mxu1  ;;  %v2052_v56 = vsel %vm508_vm1, %v2046_v54, 0.0  ;;  %v2042_v57 = vadd.f32 %v2866_v55, %v1947_v49 }
 0x750   : > { %v2037_v58 = vadd.f32 %v2036_v24, %v1947_v49  ;;  %2053 = vadd.xlane.f32.xlu1 %v2052_v56  ;;  %v2049_v59 = vsel %vm508_vm1, %v2045_v26, 0.0  ;;  %v2113_v49 = vrot.slane %v3237_v12, %v2112_v43 }
 0x751   : > { %2050 = vadd.xlane.f32.xlu0 %v2049_v59  ;;  %v2048_v62 = vadd.f32 %v2042_v57, %v3229_v8 }
 0x752   : > { %v2047_v60 = vadd.f32 %v2037_v58, %v3223_v7 }
 0x753   : > { %v2058_v6 = vsel %vm508_vm1, %v2048_v62, 0.0 }
 0x754   : > { %v2055_v61 = vsel %vm508_vm1, %v2047_v60, 0.0 }
 0x755   : > { %2056 = vadd.xlane.f32.xlu0 %v2055_v61  ;;  %v496_v61 = vld [vmem:[%s3178_s25 + $0x8] sm:$0xff] }
 0x759   : > { %2059 = vadd.xlane.f32.xlu0 %v2058_v6  ;;  %v497_v6 = vld [vmem:[%s3178_s25 + $0x10] sm:$0xff] }
 0x7dd   : > { %v2054_v4 = vpop.xlane.xlu1 %2053 }
 0x7de   : > { %v2063_v63 = vmul.f32 0.03125, %v2054_v4  ;;  %v2051_v0 = vpop.xlane.xlu0 %2050  ;;  %v498_v4 = vld [vmem:[%s3178_s25 + $0x18] sm:$0xff] }
 0x7df   : > { %v2062_v1 = vmul.f32 0.03125, %v2051_v0  ;;  %v499_v0 = vld [vmem:[%s3178_s25 + $0x20] sm:$0xff] }
 0x7e0   : > { %v2067_v2 = vsub.f32 %v2046_v54, %v2063_v63  ;;  %v2942_v63 = vpack.c.bf16 %v498_v4, %v497_v6 }
 0x7e1   : > { %v2066_v3 = vsub.f32 %v2045_v26, %v2062_v1  ;;  %v500_v1 = vld [vmem:[%s3178_s25 + $0x28] sm:$0xff] }
 0x7e2   : > { %v2057_v5 = vpop.xlane.xlu0 %2056  ;;  %v2071_v9 = vmul.f32 %v2067_v2, %v2067_v2 }
 0x7e3   : > { %v2064_v11 = vmul.f32 0.03125, %v2057_v5  ;;  %v2070_v14 = vmul.f32 %v2066_v3, %v2066_v3  ;;  %v502_v5 = vld [vmem:[%s3178_s25 + $0x38] sm:$0xff] }
 0x7e4   : > { %v2077_v7 = vsel %vm508_vm1, %v2071_v9, 0.0 }
 0x7e5   : > { %v2068_v15 = vsub.f32 %v2047_v60, %v2064_v11  ;;  %2078 = vadd.xlane.f32.xlu0 %v2077_v7  ;;  %v2074_v8 = vsel %vm508_vm1, %v2070_v14, 0.0  ;;  %v495_v60 = vld [vmem:[%s3178_s25] sm:$0xff]  ;;  %v2120_v11 = vsub.s32 4, %v3233_v10 }
 0x7e6   : > { %2075 = vadd.xlane.f32.xlu1 %v2074_v8  ;;  %v2060_v16 = vpop.xlane.xlu0 %2059 }
 0x7e7   : > { %v2065_v17 = vmul.f32 0.03125, %v2060_v16  ;;  %v2072_v18 = vmul.f32 %v2068_v15, %v2068_v15  ;;  %v2121_v14 = vrot.slane %v3237_v12, %v2120_v11 }
 0x7e9   : > { %v2069_v19 = vsub.f32 %v2048_v62, %v2065_v17  ;;  %v2080_v20 = vsel %vm508_vm1, %v2072_v18, 0.0  ;;  %v2938_v62 = vpack.c.bf16 %v496_v61, %v495_v60 }
 0x7ea   : > { %2081 = vadd.xlane.f32.xlu1 %v2080_v20 }
 0x7eb   : > { %v2073_v21 = vmul.f32 %v2069_v19, %v2069_v19  ;;  %2939 = vmatprep.subr.bf16.mxu1 %v2938_v62 }
 0x7ec   : > { %2941 = vmatpush3.bf16.msra.mxu1 %v2938_v62 }
 0x7ed   : > { %v2083_v22 = vsel %vm508_vm1, %v2073_v21, 0.0  ;;  %2943 = vmatprep.subr.bf16.mxu1 %v2942_v63 }
 0x7ee   : > { %2084 = vadd.xlane.f32.xlu0 %v2083_v22 }
 0x7f0   : > { %2945 = vmatpush3.bf16.msra.mxu1 %v2942_v63 }
 0x872   : > { %v2079_v30 = vpop.xlane.xlu0 %2078 }
 0x873   : > { %v2087_v31 = vmul.f32 0.03125, %v2079_v30  ;;  %v2076_v32 = vpop.xlane.xlu1 %2075 }
 0x874   : > { %v2086_v33 = vmul.f32 0.03125, %v2076_v32 }
 0x875   : > { %v2091_v34 = vadd.f32 1e-12, %v2087_v31 }
 0x876   : > { %v2090_v35 = vadd.f32 1e-12, %v2086_v33 }
 0x877   : > { %3024 = vrsqrt.f32 %v2091_v34  ;;  %v2082_v36 = vpop.xlane.xlu1 %2081 }
 0x878   : > { %3026 = vrsqrt.f32 %v2090_v35  ;;  %v2088_v37 = vmul.f32 0.03125, %v2082_v36 }
 0x87a   : > { %v2092_v38 = vadd.f32 1e-12, %v2088_v37 }
 0x87b   : > { %v2085_v39 = vpop.xlane.xlu0 %2084 }
 0x87c   : > { %3028 = vrsqrt.f32 %v2092_v38  ;;  %v2089_v40 = vmul.f32 0.03125, %v2085_v39 }
 0x87e   : > { %v2093_v42 = vadd.f32 1e-12, %v2089_v40 }
 0x880   : > { %3030 = vrsqrt.f32 %v2093_v42  ;;  %v2242_v42 = vsub.s32 5, %v3233_v10 }
 0x881   : > { %v3025_v45 = vpop.eup %3024 }
 0x882   : > { %v3027_v46 = vpop.eup %3026  ;;  %v2099_v47 = vmul.f32 %v3025_v45, %v2067_v2  ;;  %v2946_v2 = vpack.c.bf16 %v500_v1, %v499_v0  ;;  %v2243_v43 = vrot.slane %v3237_v12, %v2242_v42 }
 0x883   : > { %v2098_v48 = vmul.f32 %v3027_v46, %v2066_v3  ;;  %v501_v3 = vld [vmem:[%s3178_s25 + $0x30] sm:$0xff] }
 0x884   : > { %v2107_v50 = vmul.f32 %v2105_v44, %v2099_v47  ;;  %2947 = vmatprep.subr.bf16.mxu1 %v2946_v2  ;;  %v2950_v9 = vpack.c.bf16 %v502_v5, %v501_v3 }
 0x885   : > { %v2106_v51 = vmul.f32 %v2105_v44, %v2098_v48  ;;  %2949 = vmatpush3.bf16.msra.mxu1 %v2946_v2 }
 0x886   : > { %v3029_v52 = vpop.eup %3028  ;;  %v3440_v55 = vadd.f32 %v2113_v49, %v2107_v50  ;;  %2951 = vmatprep.subr.bf16.mxu1 %v2950_v9 }
 0x887   : > { %v3438_v53 = vadd.f32 %v2113_v49, %v2106_v51  ;;  %v2100_v54 = vmul.f32 %v3029_v52, %v2068_v15 }
 0x889   : > { %2875 = vmatprep.mubr.msk.f32.mxu0 %vm508_vm1, %v3438_v53  ;;  %v2108_v26 = vmul.f32 %v2105_v44, %v2100_v54  ;;  %2953 = vmatpush3.bf16.msra.mxu1 %v2950_v9 }
 0x88a   : > { %v3031_v24 = vpop.eup %3030  ;;  %2876 = vmatmul.mubr.msk.f32.vlgmr.msra.gmra.mrb[20].mxu0 %vm508_vm1, %v3440_v55 }
 0x88b   : > { %v3446_v56 = vadd.f32 %v2113_v49, %v2108_v26  ;;  %v2101_v57 = vmul.f32 %v3031_v24, %v2069_v19 }
 0x88d   : > { %2878 = vmatprep.mubr.msk.f32.mxu0 %vm508_vm1, %v3446_v56  ;;  %v2109_v58 = vmul.f32 %v2105_v44, %v2101_v57 }
 0x88f   : > { %v3450_v59 = vadd.f32 %v2113_v49, %v2109_v58 }
 0x891   : > { %2879 = vmatmul.mubr.msk.f32.gmra.mrb[22].mxu0 %vm508_vm1, %v3450_v59 }
 0x95d   : > { %v2877_v7 = vpop.f32.mrb[20].mxu0 }
 0x95e   : > { %v2206_v15 = vadd.f32 %v2877_v7, %v2121_v14  ;;  %v2200_v8 = vpop.f32.mrb[21].mxu0 }
 0x95f   : > { %v2201_v16 = vadd.f32 %v2200_v8, %v2121_v14 }
 0x960   : > { %v2225_v17 = vmul.f32 0.70710677, %v2206_v15  ;;  %v2220_v31 = vmul.f32 0.5, %v2206_v15 }
 0x961   : > { %v2224_v18 = vmul.f32 0.70710677, %v2201_v16  ;;  %v2219_v13 = vmul.f32 0.5, %v2201_v16 }
 0x962   : > { %3032 = verf.f32 %v2225_v17 }
 0x963   : > { %3034 = verf.f32 %v2224_v18 }
 0x964   : > { %v2880_v19 = vpop.f32.mrb[22].mxu0 }
 0x965   : > { %v2216_v20 = vadd.f32 %v2880_v19, %v2121_v14  ;;  %v2210_v21 = vpop.f32.mrb[23].mxu0 }
 0x966   : > { %v2211_v22 = vadd.f32 %v2210_v21, %v2121_v14 }
 0x967   : > { %v2227_v23 = vmul.f32 0.70710677, %v2216_v20  ;;  %v2222_v39 = vmul.f32 0.5, %v2216_v20 }
 0x968   : > { %v2226_v25 = vmul.f32 0.70710677, %v2211_v22  ;;  %v2221_v37 = vmul.f32 0.5, %v2211_v22 }
 0x969   : > { %3036 = verf.f32 %v2227_v23 }
 0x96a   : > { %3038 = verf.f32 %v2226_v25 }
 0x96c   : > { %v3033_v27 = vpop.eup %3032 }
 0x96d   : > { %v3035_v28 = vpop.eup %3034  ;;  %v2233_v29 = vadd.f32 1.0, %v3033_v27 }
 0x96e   : > { %v2232_v30 = vadd.f32 1.0, %v3035_v28 }
 0x96f   : > { %v2237_v33 = vmul.f32 %v2233_v29, %v2220_v31  ;;  %v2400_v29 = vsub.s32 6, %v3233_v10  ;;  %v2408_v31 = vsub.s32 7, %v3233_v10 }
 0x970   : > { %v2236_v32 = vmul.f32 %v2232_v30, %v2219_v13 }
 0x972   : > { %2897 = vmatprep.mubr.msk.f32.mxu1 %vm2244_vm5, %v2236_v32  ;;  %v2401_v32 = vrot.slane %v3237_v12, %v2400_v29 }
 0x973   : > { %v3037_v34 = vpop.eup %3036  ;;  %2898 = vmatmul.mubr.msk.f32.vlgmr.msra.gmra.mrb[20].mxu1 %vm2244_vm5, %v2237_v33 }
 0x974   : > { %v3039_v35 = vpop.eup %3038  ;;  %v2235_v36 = vadd.f32 1.0, %v3037_v34 }
 0x975   : > { %v2234_v38 = vadd.f32 1.0, %v3039_v35  ;;  %v2409_v35 = vrot.slane %v3237_v12, %v2408_v31  ;;  %v2422_v12 = vld [vmem:[%s3536_s7] sm:$0xff] (!%p2675_p5) }
 0x976   : > { %v2239_v41 = vmul.f32 %v2235_v36, %v2222_v39 }
 0x977   : > { %v2238_v40 = vmul.f32 %v2234_v38, %v2221_v37 }
 0x979   : > { %2900 = vmatprep.mubr.msk.f32.mxu1 %vm2244_vm5, %v2238_v40 }
 0x97a   : > { %2901 = vmatmul.mubr.msk.f32.gmra.mrb[22].mxu1 %vm2244_vm5, %v2239_v41 }
 0xa46   : > { %v2899_v44 = vpop.f32.mrb[20].mxu1 }
 0xa47   : > { %v2329_v45 = vadd.f32 %v2899_v44, %v2243_v43  ;;  %v2323_v46 = vpop.f32.mrb[21].mxu1 }
 0xa48   : > { %v2324_v47 = vadd.f32 %v2323_v46, %v2243_v43 }
 0xa49   : > { %v2343_v48 = vadd.f32 %v2329_v45, %v3440_v55 }
 0xa4a   : > { %v2342_v49 = vadd.f32 %v2324_v47, %v3438_v53 }
 0xa4b   : > { %v2349_v50 = vsel %vm508_vm1, %v2343_v48, 0.0 }
 0xa4c   : > { %2350 = vadd.xlane.f32.xlu0 %v2349_v50  ;;  %v2346_v51 = vsel %vm508_vm1, %v2342_v49, 0.0  ;;  %v2424_v50 = vld [vmem:[%s3536_s7 + $0x10] sm:$0xff] (!%p2675_p5) }
 0xa4d   : > { %2347 = vadd.xlane.f32.xlu1 %v2346_v51  ;;  %v2902_v52 = vpop.f32.mrb[22].mxu1  ;;  %v3094_v51 = vmov (!%p2675_p5), 0.0|0.0  }
 0xa4e   : > { %v2339_v54 = vadd.f32 %v2902_v52, %v2243_v43  ;;  %v2333_v26 = vpop.f32.mrb[23].mxu1  ;;  %2954 = vmatprep.subr.bf16.mxu0 (!%p2675_p5), %v3094_v51 }
 0xa4f   : > { %v2334_v24 = vadd.f32 %v2333_v26, %v2243_v43  ;;  %v3096_v26 = vmov (!%p2675_p5), 0.0  }
 0xa50   : > { %v2345_v57 = vadd.f32 %v2339_v54, %v3450_v59  ;;  %v2425_v54 = vld [vmem:[%s3536_s7 + $0x18] sm:$0xff] (!%p2675_p5)  ;;  %2911 = vmatprep.mubr.msk.f32.mxu0 (!%p2675_p5), %vm3095_vm6, %v3096_v26 }
 0xa51   : > { %v2344_v58 = vadd.f32 %v2334_v24, %v3446_v56 }
 0xa52   : > { %v2355_v60 = vsel %vm508_vm1, %v2345_v57, 0.0 }
 0xa53   : > { %2356 = vadd.xlane.f32.xlu0 %v2355_v60  ;;  %v2352_v55 = vsel %vm508_vm1, %v2344_v58, 0.0 }
 0xa54   : > { %2353 = vadd.xlane.f32.xlu1 %v2352_v55 }
 0xad9   : > { %v2351_v53 = vpop.xlane.xlu0 %2350 }
 0xada   : > { %v2359_v61 = vmul.f32 0.03125, %v2351_v53  ;;  %v2348_v62 = vpop.xlane.xlu1 %2347 }
 0xadb   : > { %v2358_v6 = vmul.f32 0.03125, %v2348_v62  ;;  %v2676_v62 = vld [vmem:[%s3537_s8] ss:$0 sm:$0xff] (!%p2675_p5) }
 0xadc   : > { %v2363_v4 = vsub.f32 %v2343_v48, %v2359_v61 }
 0xadd   : > { %v2362_v63 = vsub.f32 %v2342_v49, %v2358_v6  ;;  %v2423_v49 = vld [vmem:[%s3536_s7 + $0x8] sm:$0xff] (!%p2675_p5) }
 0xade   : > { %v2367_v0 = vmul.f32 %v2363_v4, %v2363_v4  ;;  %v2955_v52 = vpack.c.bf16 (!%p2675_p5), %v2423_v49, %v2422_v12 }
 0xadf   : > { %v2366_v1 = vmul.f32 %v2362_v63, %v2362_v63 }
 0xae0   : > { %v2357_v2 = vpop.xlane.xlu0 %2356  ;;  %v2373_v3 = vsel %vm508_vm1, %v2367_v0, 0.0  ;;  %2956 = vmatpush3.bf16.msra.mxu0 (!%p2675_p5), %v2955_v52 }
 0xae1   : > { %v2361_v59 = vmul.f32 0.03125, %v2357_v2  ;;  %v2354_v5 = vpop.xlane.xlu1 %2353  ;;  %2374 = vadd.xlane.f32.xlu0 %v2373_v3  ;;  %v2370_v56 = vsel %vm508_vm1, %v2366_v1, 0.0  ;;  %2957 = vmatprep.subr.bf16.mxu0 (!%p2675_p5), %v3094_v51 }
 0xae2   : > { %v2360_v9 = vmul.f32 0.03125, %v2354_v5  ;;  %2371 = vadd.xlane.f32.xlu1 %v2370_v56 }
 0xae3   : > { %v2365_v11 = vsub.f32 %v2345_v57, %v2361_v59 }
 0xae4   : > { %v2364_v14 = vsub.f32 %v2344_v58, %v2360_v9  ;;  %v2958_v58 = vpack.c.bf16 (!%p2675_p5), %v2425_v54, %v2424_v50 }
 0xae5   : > { %v2369_v7 = vmul.f32 %v2365_v11, %v2365_v11 }
 0xae6   : > { %v2368_v15 = vmul.f32 %v2364_v14, %v2364_v14  ;;  %2959 = vmatpush3.bf16.msra.mxu0 (!%p2675_p5), %v2958_v58 }
 0xae7   : > { %v2379_v8 = vsel %vm508_vm1, %v2369_v7, 0.0 }
 0xae8   : > { %2380 = vadd.xlane.f32.xlu0 %v2379_v8  ;;  %v2376_v16 = vsel %vm508_vm1, %v2368_v15, 0.0 }
 0xae9   : > { %2377 = vadd.xlane.f32.xlu1 %v2376_v16 }
 0xb6e   : > { %v2375_v17 = vpop.xlane.xlu0 %2374 }
 0xb6f   : > { %v2383_v18 = vmul.f32 0.03125, %v2375_v17  ;;  %v2372_v19 = vpop.xlane.xlu1 %2371 }
 0xb70   : > { %v2382_v20 = vmul.f32 0.03125, %v2372_v19 }
 0xb71   : > { %v2387_v21 = vadd.f32 1e-12, %v2383_v18 }
 0xb72   : > { %v2386_v22 = vadd.f32 1e-12, %v2382_v20 }
 0xb73   : > { %3040 = vrsqrt.f32 %v2387_v21 }
 0xb74   : > { %3042 = vrsqrt.f32 %v2386_v22 }
 0xb75   : > { %v2381_v23 = vpop.xlane.xlu0 %2380 }
 0xb76   : > { %v2385_v25 = vmul.f32 0.03125, %v2381_v23  ;;  %v2378_v27 = vpop.xlane.xlu1 %2377 }
 0xb77   : > { %v2384_v28 = vmul.f32 0.03125, %v2378_v27 }
 0xb78   : > { %v2389_v13 = vadd.f32 1e-12, %v2385_v25 }
 0xb79   : > { %v2388_v30 = vadd.f32 1e-12, %v2384_v28 }
 0xb7a   : > { %3044 = vrsqrt.f32 %v2389_v13 }
 0xb7b   : > { %3046 = vrsqrt.f32 %v2388_v30 }
 0xb7d   : > { %v3041_v33 = vpop.eup %3040 }
 0xb7e   : > { %v3043_v34 = vpop.eup %3042  ;;  %v2395_v36 = vmul.f32 %v3041_v33, %v2363_v4 }
 0xb7f   : > { %v2394_v37 = vmul.f32 %v3043_v34, %v2362_v63 }
 0xb80   : > { %v2403_v38 = vmul.f32 %v2401_v32, %v2395_v36 }
 0xb81   : > { %v2402_v39 = vmul.f32 %v2401_v32, %v2394_v37 }
 0xb82   : > { %v2411_v40 = vadd.f32 %v2409_v35, %v2403_v38 }
 0xb83   : > { %v2410_v41 = vadd.f32 %v2409_v35, %v2402_v39 }
 0xb84   : > { %v3045_v42 = vpop.eup %3044  ;;  %2415 = vst.msk [vmem:[#allocation2 + $0x8] sm:$0xff] %vm508_vm1, %v2411_v40  ;;  %v2437_v24 = vrot.slane (!%p2675_p5), %v2411_v40, 7 }
 0xb85   : > { %v3047_v43 = vpop.eup %3046  ;;  %2414 = vst.msk [vmem:[#allocation2] sm:$0xff] %vm508_vm1, %v2410_v41  ;;  %v2397_v10 = vmul.f32 %v3045_v42, %v2365_v11 }
 0xb86   : > { %v2396_v44 = vmul.f32 %v3047_v43, %v2364_v14  ;;  %2421 = sbr.rel (%p2675_p5) target bundleno = 3335 (0xd07), region = 64  ;;  %v2439_v60 = vsel (!%p2675_p5), %vm2438_vm7, %v2437_v24, %v2410_v41 }
 0xb87   : > { %v2405_v45 = vmul.f32 %v2401_v32, %v2397_v10 }
 0xb88   : > { %v2404_v46 = vmul.f32 %v2401_v32, %v2396_v44 }
 0xb89   : > { %v2413_v47 = vadd.f32 %v2409_v35, %v2405_v45 }
 0xb8a   : > { %v2412_v48 = vadd.f32 %v2409_v35, %v2404_v46 }
 0xb8b   : > { %2417 = vst.msk [vmem:[#allocation2 + $0x18] sm:$0xff] %vm508_vm1, %v2413_v47  ;;  %v2443_v55 = vrot.slane (!%p2675_p5), %v2413_v47, 5 }
 0xb8c   : > { %2416 = vst.msk [vmem:[#allocation2 + $0x10] sm:$0xff] %vm508_vm1, %v2412_v48  ;;  %v2440_v57 = vrot.slane (!%p2675_p5), %v2412_v48, 6 }
 0xb8e   : > { %v2442_v53 = vsel %vm2441_vm8, %v2440_v57, %v2439_v60 }
 0xb8f   : > { %v2445_v61 = vsel %vm2444_vm9, %v2443_v55, %v2442_v53 }
 0xb90   : > { %2912 = vmatmul.mubr.msk.f32.vlgmr.msra.gmra.mrb[0].mxu0 %vm508_vm1, %v2445_v61 }
 0xc63   : > { %v2514_v6 = vpop.f32.mrb[0].mxu0 }
 0xc64   : > { %v2515_v4 = vadd.f32 %v2676_v62, %v2514_v6  ;;  %v2913_v63 = vpop.f32.mrb[1].mxu0 }
 0xc66   : > { %v2518_v0 = vmul.f32 %v2515_v4, %v2515_v4 }
 0xc68   : > { %v2520_v1 = vsel %vm2519_vm10, %v2518_v0, 0.0 }
 0xc69   : > { %2521 = vadd.xlane.f32.xlu0 %v2520_v1 }
 0xcf6   : > { %v2522_v2 = vpop.xlane.xlu0 %2521 }
 0xcf7   : > { %v2523_v3 = vmax.f32 %v2522_v2, 1e-24 }
 0xcf9   : > { %3048 = vrsqrt.f32 %v2523_v3 }
 0xd03   : > { %v3049_v59 = vpop.eup %3048 }
 0xd04   : > { %v2525_v5 = vmul.f32 %v3049_v59, %v2515_v4 }
 0xd06   : > { %2526 = vst [vmem:[#allocation3] sm:$0xf] %v2525_v5 }
 0xd07 PF: > { %p2964_p6 = scmp.eq.s32.totalorder %s3154_s10, 1  ;;  %s3097_s18 = smov [#allocation3]  }
 0xd08   : > { %s2534_s11 = sshll.u32 %s3097_s18, 4  ;;  %s2535_s11 = int_to_ptr.vmem [resolvable:$true] %s2534_s11 }
 0xd09   : > { %s3050_s20 = scalar_lea.vmem %s2535_s11, 64  ;;  %p3057_p10 = scmp.lt.s32.totalorder %s2535_s11, %s2535_s11 }
 0xd0a   : > { %p3051_p7 = scmp.ne.s32.totalorder %s2535_s11, %s3050_s20  ;;  %p3058_p11 = scmp.lt.s32.totalorder %s3050_s20, %s3050_s20 }
 0xd0c   : > { %p3052_p8 = pnand %p3051_p7, %p2964_p6  ;;  %p3059_p12 = por %p3058_p11, %p3057_p10 }
 0xd0e   : > { %p3053_p9 = pneg %p3052_p8 }
 0xd10   : > { %p3060_p13 = pnand %p3059_p12, %p3053_p9 }
 0xd12   : > { %3063 = shalt.err (!%p3060_p13)
}
 0xd13   : > { %s3064_s16 = scalar_lea.hbm %s3538_s9, 64 }
 0xd14   : > { %p3065_p0 = scmp.ne.s32.totalorder %s3538_s9, %s3064_s16  ;;  %p3070_p3 = scmp.lt.u32.totalorder %s3064_s16, %s3538_s9 }
 0xd16   : > { %p3066_p1 = pnand %p3065_p0, %p2964_p6 }
 0xd18   : > { %p3067_p2 = pneg %p3066_p1 }
 0xd1a   : > { %p3072_p4 = pnand %p3070_p3, %p3067_p2 }
 0xd1c   : > { %3075 = shalt.err (!%p3072_p4)
}
 0xd1d   : > { %2961 = dma.vmem_to_hbm [thread:$0]  (%p2964_p6), %s2535_s11, 64, %s3538_s9, [#allocation4]  }
 0xd1e   : > { %3081 = dma.done.wait (%p2964_p6), [#allocation4], 64  }
 0xd1f   : > { %3083 = vsyncadd (%p2964_p6), [#allocation4], 4294967232 }
 0xd20 PF: > { %s20_s30 = sadd.s32 1, %s3086_s30  }
 0xd21   : > { %p17_p5 = scmp.ge.s32.totalorder %s20_s30, 4  }
 0xd23   :  { %19 = sbr.rel (!%p17_p5) target bundleno = 1 (0x1), region = 103 }
 0xd2a   :  { %2547 = vsyncpa [#allocation4], 1 }
 0xd2b   :  { %2549 = vsyncpa [#allocation4 + $0x1], 1 }

</bundles_post_ra>
